<compile_context>
chip_gen: v7x
topology: tpu7x:2x2x1
jax: 0.10.0
libtpu: 0.0.40
codegen_flags: <defaults>
</compile_context>

<pallas_src>
import functools

import jax
import jax.numpy as jnp
from jax.experimental import pallas as pl
from jax.experimental.pallas import tpu as pltpu

# logical (PyTorch) dims
C_NUM = 10
H_DIM = 200
IMAGE_SIZE = 784
Z_DIM = 100

# lane-padded dims (multiples of 128)
H_PAD = 256
Z_PAD = 128
IMG_PAD = 896


def _round_up(n, m):
    return (n + m - 1) // m * m


# --------------------------------------------------------------------------- #
# Kernel: one batch tile per grid step; weights are resident.
# --------------------------------------------------------------------------- #
def _cvae_kernel(
    x_ref, eps_ref, cb1_ref, cb4_ref,          # per-row (batch-tiled) inputs
    w1_ref, w23_ref, b23_ref, w4_ref, w5_ref, b5_ref,  # resident weights
    xr_ref, mu_ref, lv_ref,                    # outputs
):
    bf16 = jnp.bfloat16

    # ---- encode: h = relu(x @ W1 + (W1c[c] + b1)) ----
    h = jnp.dot(x_ref[...], w1_ref[...], preferred_element_type=jnp.float32)
    h = jnp.maximum(h + cb1_ref[...], 0.0)

    # ---- fused fc2|fc3: single (H_PAD, 2*Z_PAD) matmul, split at lane 128 ----
    ml = jnp.dot(h.astype(bf16), w23_ref[...],
                 preferred_element_type=jnp.float32) + b23_ref[...]
    mu = ml[:, :Z_PAD]
    log_var = ml[:, Z_PAD:]

    # ---- reparameterize: z = mu + eps * exp(log_var / 2) ----
    z = mu + eps_ref[...] * jnp.exp(log_var * 0.5)

    # ---- decode: x_rec = sigmoid(fc5(relu(z @ W4 + (W4c[c] + b4)))) ----
    h2 = jnp.dot(z.astype(bf16), w4_ref[...],
                 preferred_element_type=jnp.float32)
    h2 = jnp.maximum(h2 + cb4_ref[...], 0.0)
    logits = jnp.dot(h2.astype(bf16), w5_ref[...],
                     preferred_element_type=jnp.float32) + b5_ref[...]

    xr_ref[...] = jax.nn.sigmoid(logits)
    mu_ref[...] = mu
    lv_ref[...] = log_var


# --------------------------------------------------------------------------- #
# Parameter init (torch-like xavier_normal_ on weights, uniform on biases),
# then padded to lane multiples and cast to bf16 for the big matmul operands.
# --------------------------------------------------------------------------- #
def _xavier_normal(key, shape, fan_in, fan_out):
    std = (2.0 / (fan_in + fan_out)) ** 0.5
    return jax.random.normal(key, shape, jnp.float32) * std


def _bias_uniform(key, n, fan_in):
    bound = 1.0 / (fan_in ** 0.5)
    return jax.random.uniform(key, (1, n), jnp.float32, -bound, bound)


def init_cvae_params(key):
    k1, k2, k3, k4, k5, kb = jax.random.split(key, 6)
    kb1, kb2, kb3, kb4, kb5 = jax.random.split(kb, 5)

    fi1 = IMAGE_SIZE + C_NUM          # torch fc1 fan-in (concat of x and one-hot)
    fi4 = Z_DIM + C_NUM               # torch fc4 fan-in
    w1x = _xavier_normal(k1, (IMAGE_SIZE, H_DIM), fi1, H_DIM)
    w1c = _xavier_normal(jax.random.fold_in(k1, 1), (C_NUM, H_DIM), fi1, H_DIM)
    w2 = _xavier_normal(k2, (H_DIM, Z_DIM), H_DIM, Z_DIM)
    w3 = _xavier_normal(k3, (H_DIM, Z_DIM), H_DIM, Z_DIM)
    w4z = _xavier_normal(k4, (Z_DIM, H_DIM), fi4, H_DIM)
    w4c = _xavier_normal(jax.random.fold_in(k4, 1), (C_NUM, H_DIM), fi4, H_DIM)
    w5 = _xavier_normal(k5, (H_DIM, IMAGE_SIZE), H_DIM, IMAGE_SIZE)

    b1 = _bias_uniform(kb1, H_DIM, fi1)
    b2 = _bias_uniform(kb2, Z_DIM, H_DIM)
    b3 = _bias_uniform(kb3, Z_DIM, H_DIM)
    b4 = _bias_uniform(kb4, H_DIM, fi4)
    b5 = _bias_uniform(kb5, IMAGE_SIZE, H_DIM)

    def pad2(a, r, c):
        return jnp.pad(a, ((0, r - a.shape[0]), (0, c - a.shape[1])))

    # fused fc2|fc3 weight/bias, each head padded to Z_PAD lanes
    w23 = jnp.concatenate([pad2(w2, H_DIM, Z_PAD), pad2(w3, H_DIM, Z_PAD)], axis=1)
    b23 = jnp.concatenate([pad2(b2, 1, Z_PAD), pad2(b3, 1, Z_PAD)], axis=1)

    return {
        # big matmul weights: padded, bf16 (MXU accumulates in f32)
        "w1": pad2(w1x, IMG_PAD, H_PAD).astype(jnp.bfloat16),
        "w23": pad2(w23, H_PAD, 2 * Z_PAD).astype(jnp.bfloat16),
        "w4": pad2(w4z, Z_PAD, H_PAD).astype(jnp.bfloat16),
        "w5": pad2(w5, H_PAD, IMG_PAD).astype(jnp.bfloat16),
        # small f32 pieces used for wrapper-side class-bias gather
        "w1c": pad2(w1c, C_NUM, H_PAD),
        "w4c": pad2(w4c, C_NUM, H_PAD),
        "b1": pad2(b1, 1, H_PAD),
        "b23": b23,
        "b4": pad2(b4, 1, H_PAD),
        "b5": pad2(b5, 1, IMG_PAD),
    }


# --------------------------------------------------------------------------- #
# Wrapper
# --------------------------------------------------------------------------- #
@functools.partial(jax.jit, static_argnames=("batch_tile",))
def cvae_forward(params, x, c, eps, *, batch_tile=128):
    """x: (B, 784) f32, c: (B,) int32 labels, eps: (B, 100) f32 noise."""
    B = x.shape[0]
    tb = min(batch_tile, _round_up(B, 8))     # batch tile (sublane multiple)
    b_pad = _round_up(B, tb)
    n_tiles = b_pad // tb

    # pad batch & feature dims; cast the matmul stream to bf16
    xp = jnp.zeros((b_pad, IMG_PAD), jnp.bfloat16).at[:B, :IMAGE_SIZE].set(
        x.astype(jnp.bfloat16))
    epsp = jnp.zeros((b_pad, Z_PAD), jnp.float32).at[:B, :Z_DIM].set(eps)

    # torch's concat([., one_hot]) matmul == a 10-row gather of W_c plus bias
    cb1 = jnp.zeros((b_pad, H_PAD), jnp.float32).at[:B].set(
        params["w1c"][c] + params["b1"])
    cb4 = jnp.zeros((b_pad, H_PAD), jnp.float32).at[:B].set(
        params["w4c"][c] + params["b4"])

    def row(f):          # batch-tiled 2D operand
        return pl.BlockSpec((tb, f), lambda i: (i, 0))

    def resident(shape):  # weight / bias: same block every grid step
        return pl.BlockSpec(shape, lambda i: (0, 0))

    flops = 2 * b_pad * (IMG_PAD * H_PAD + H_PAD * 2 * Z_PAD
                         + Z_PAD * H_PAD + H_PAD * IMG_PAD)
    weight_bytes = sum(int(params[k].size) * params[k].dtype.itemsize
                       for k in ("w1", "w23", "b23", "w4", "w5", "b5"))
    io_bytes = (xp.size * 2 + (epsp.size + cb1.size + cb4.size) * 4
                + b_pad * (IMG_PAD + 2 * Z_PAD) * 4)

    x_rec, mu, log_var = pl.pallas_call(
        _cvae_kernel,
        out_shape=(
            jax.ShapeDtypeStruct((b_pad, IMG_PAD), jnp.float32),
            jax.ShapeDtypeStruct((b_pad, Z_PAD), jnp.float32),
            jax.ShapeDtypeStruct((b_pad, Z_PAD), jnp.float32),
        ),
        grid=(n_tiles,),
        in_specs=[
            row(IMG_PAD),                  # x
            row(Z_PAD),                    # eps
            row(H_PAD),                    # cb1
            row(H_PAD),                    # cb4
            resident((IMG_PAD, H_PAD)),    # w1
            resident((H_PAD, 2 * Z_PAD)),  # w23
            resident((1, 2 * Z_PAD)),      # b23
            resident((Z_PAD, H_PAD)),      # w4
            resident((H_PAD, IMG_PAD)),    # w5
            resident((1, IMG_PAD)),        # b5
        ],
        out_specs=(row(IMG_PAD), row(Z_PAD), row(Z_PAD)),
        compiler_params=pltpu.CompilerParams(
            dimension_semantics=("parallel",)),
        cost_estimate=pl.CostEstimate(
            flops=flops,
            transcendentals=b_pad * (Z_PAD + IMG_PAD),
            bytes_accessed=weight_bytes + io_bytes),
    )(xp, epsp, cb1, cb4,
      params["w1"], params["w23"], params["b23"],
      params["w4"], params["w5"], params["b5"])

    return (x_rec[:B, :IMAGE_SIZE], mu[:B, :Z_DIM], log_var[:B, :Z_DIM])


# --------------------------------------------------------------------------- #
# Pure-JAX reference (f32 math on the same padded weights)
# --------------------------------------------------------------------------- #
def _reference_forward(params, x, c, eps):
    f32 = jnp.float32
    coh = jax.nn.one_hot(c, C_NUM, dtype=f32)
    xp = jnp.pad(x, ((0, 0), (0, IMG_PAD - IMAGE_SIZE)))
    epsp = jnp.pad(eps, ((0, 0), (0, Z_PAD - Z_DIM)))
    cb1 = coh @ params["w1c"] + params["b1"]
    cb4 = coh @ params["w4c"] + params["b4"]
    h = jax.nn.relu(xp @ params["w1"].astype(f32) + cb1)
    ml = h @ params["w23"].astype(f32) + params["b23"]
    mu, log_var = ml[:, :Z_PAD], ml[:, Z_PAD:]
    z = mu + epsp * jnp.exp(log_var * 0.5)
    h2 = jax.nn.relu(z @ params["w4"].astype(f32) + cb4)
    xr = jax.nn.sigmoid(h2 @ params["w5"].astype(f32) + params["b5"])
    return xr[:, :IMAGE_SIZE], mu[:, :Z_DIM], log_var[:, :Z_DIM]


if __name__ == "__main__":
    key = jax.random.PRNGKey(0)
    k_param, k_x, k_c, k_eps = jax.random.split(key, 4)

    B = 8
    params = init_cvae_params(k_param)
    x = jax.random.uniform(k_x, (B, IMAGE_SIZE), jnp.float32)      # pixels in [0,1)
    c = jax.random.randint(k_c, (B,), 0, C_NUM, jnp.int32)         # class labels
    # TODO(synk): torch draws eps internally via randn_like; here the noise is an
    # explicit input so the kernel stays deterministic.
    eps = jax.random.normal(k_eps, (B, Z_DIM), jnp.float32)

    x_rec, mu, log_var = cvae_forward(params, x, c, eps)
    jax.block_until_ready((x_rec, mu, log_var))

    xr_r, mu_r, lv_r = _reference_forward(params, x, c, eps)
    assert x_rec.shape == (B, IMAGE_SIZE)
    assert mu.shape == (B, Z_DIM) and log_var.shape == (B, Z_DIM)
    # kernel runs bf16 activations/weights with f32 accumulation vs f32 reference
    assert jnp.allclose(x_rec, xr_r, atol=3e-2, rtol=3e-2)
    assert jnp.allclose(mu, mu_r, atol=3e-2, rtol=3e-2)
    assert jnp.allclose(log_var, lv_r, atol=3e-2, rtol=3e-2)

    print("KERNEL_OK")
</pallas_src>

<mosaic_0001>
module attributes {stable_mosaic.version = 11 : i64} {
  func.func @_cvae_kernel(%arg0: i32, %arg1: memref<8x896xbf16, #tpu.memory_space<vmem>>, %arg2: memref<8x128xf32, #tpu.memory_space<vmem>>, %arg3: memref<8x256xf32, #tpu.memory_space<vmem>>, %arg4: memref<8x256xf32, #tpu.memory_space<vmem>>, %arg5: memref<896x256xbf16, #tpu.memory_space<vmem>>, %arg6: memref<256x256xbf16, #tpu.memory_space<vmem>>, %arg7: memref<1x256xf32, #tpu.memory_space<vmem>>, %arg8: memref<128x256xbf16, #tpu.memory_space<vmem>>, %arg9: memref<256x896xbf16, #tpu.memory_space<vmem>>, %arg10: memref<1x896xf32, #tpu.memory_space<vmem>>, %arg11: memref<8x896xf32, #tpu.memory_space<vmem>>, %arg12: memref<8x128xf32, #tpu.memory_space<vmem>>, %arg13: memref<8x128xf32, #tpu.memory_space<vmem>>) attributes {dimension_semantics = [#tpu.dimension_semantics<parallel>], iteration_bounds = array<i64: 1>, scalar_prefetch = 0 : i64, scratch_operands = 0 : i64, tpu.core_type = #tpu.core_type<tc>, window_params = [{transform_indices = @transform_0, window_bounds = array<i64: 8, 896>}, {transform_indices = @transform_1, window_bounds = array<i64: 8, 128>}, {transform_indices = @transform_2, window_bounds = array<i64: 8, 256>}, {transform_indices = @transform_3, window_bounds = array<i64: 8, 256>}, {pipeline_mode = #tpu.pipeline_mode<synchronous>, transform_indices = @transform_4, window_bounds = array<i64: 896, 256>}, {pipeline_mode = #tpu.pipeline_mode<synchronous>, transform_indices = @transform_5, window_bounds = array<i64: 256, 256>}, {pipeline_mode = #tpu.pipeline_mode<synchronous>, transform_indices = @transform_6, window_bounds = array<i64: 1, 256>}, {pipeline_mode = #tpu.pipeline_mode<synchronous>, transform_indices = @transform_7, window_bounds = array<i64: 128, 256>}, {pipeline_mode = #tpu.pipeline_mode<synchronous>, transform_indices = @transform_8, window_bounds = array<i64: 256, 896>}, {pipeline_mode = #tpu.pipeline_mode<synchronous>, transform_indices = @transform_9, window_bounds = array<i64: 1, 896>}, {transform_indices = @transform_10, window_bounds = array<i64: 8, 896>}, {transform_indices = @transform_11, window_bounds = array<i64: 8, 128>}, {transform_indices = @transform_12, window_bounds = array<i64: 8, 128>}]} {
    %c0 = arith.constant 0 : index
    %c0_0 = arith.constant 0 : index
    %0 = vector.load %arg1[%c0, %c0_0] : memref<8x896xbf16, #tpu.memory_space<vmem>>, vector<8x896xbf16>
    %c0_1 = arith.constant 0 : index
    %c0_2 = arith.constant 0 : index
    %1 = vector.load %arg5[%c0_1, %c0_2] : memref<896x256xbf16, #tpu.memory_space<vmem>>, vector<896x256xbf16>
    %cst = arith.constant dense<0.000000e+00> : vector<8x256xf32>
    %2 = tpu.matmul %0, %1, %cst {dimension_numbers = #tpu.dot_dimension_numbers<[1], [0], [0], [1], [0, 0, 1, 1], [], []>} : vector<8x896xbf16>, vector<896x256xbf16>, vector<8x256xf32> -> vector<8x256xf32>
    %c0_3 = arith.constant 0 : index
    %c0_4 = arith.constant 0 : index
    %3 = vector.load %arg3[%c0_3, %c0_4] : memref<8x256xf32, #tpu.memory_space<vmem>>, vector<8x256xf32>
    %4 = arith.addf %2, %3 : vector<8x256xf32>
    %cst_5 = arith.constant 0.000000e+00 : f32
    %5 = vector.broadcast %cst_5 : f32 to vector<8x256xf32>
    %6 = arith.maximumf %4, %5 : vector<8x256xf32>
    %7 = arith.truncf %6 : vector<8x256xf32> to vector<8x256xbf16>
    %c0_6 = arith.constant 0 : index
    %c0_7 = arith.constant 0 : index
    %8 = vector.load %arg6[%c0_6, %c0_7] : memref<256x256xbf16, #tpu.memory_space<vmem>>, vector<256x256xbf16>
    %cst_8 = arith.constant dense<0.000000e+00> : vector<8x256xf32>
    %9 = tpu.matmul %7, %8, %cst_8 {dimension_numbers = #tpu.dot_dimension_numbers<[1], [0], [0], [1], [0, 0, 1, 1], [], []>} : vector<8x256xbf16>, vector<256x256xbf16>, vector<8x256xf32> -> vector<8x256xf32>
    %c0_9 = arith.constant 0 : index
    %c0_10 = arith.constant 0 : index
    %10 = vector.load %arg7[%c0_9, %c0_10] : memref<1x256xf32, #tpu.memory_space<vmem>>, vector<1x256xf32>
    %11 = vector.broadcast %10 : vector<1x256xf32> to vector<8x256xf32>
    %12 = arith.addf %9, %11 : vector<8x256xf32>
    %13 = vector.extract_strided_slice %12 {offsets = [0, 0], sizes = [8, 128], strides = [1, 1]} : vector<8x256xf32> to vector<8x128xf32>
    %14 = vector.extract_strided_slice %12 {offsets = [0, 128], sizes = [8, 128], strides = [1, 1]} : vector<8x256xf32> to vector<8x128xf32>
    %c0_11 = arith.constant 0 : index
    %c0_12 = arith.constant 0 : index
    %15 = vector.load %arg2[%c0_11, %c0_12] : memref<8x128xf32, #tpu.memory_space<vmem>>, vector<8x128xf32>
    %cst_13 = arith.constant 5.000000e-01 : f32
    %16 = vector.broadcast %cst_13 : f32 to vector<8x128xf32>
    %17 = arith.mulf %14, %16 : vector<8x128xf32>
    %18 = math.exp %17 : vector<8x128xf32>
    %19 = arith.mulf %15, %18 : vector<8x128xf32>
    %20 = arith.addf %13, %19 : vector<8x128xf32>
    %21 = arith.truncf %20 : vector<8x128xf32> to vector<8x128xbf16>
    %c0_14 = arith.constant 0 : index
    %c0_15 = arith.constant 0 : index
    %22 = vector.load %arg8[%c0_14, %c0_15] : memref<128x256xbf16, #tpu.memory_space<vmem>>, vector<128x256xbf16>
    %cst_16 = arith.constant dense<0.000000e+00> : vector<8x256xf32>
    %23 = tpu.matmul %21, %22, %cst_16 {dimension_numbers = #tpu.dot_dimension_numbers<[1], [0], [0], [1], [0, 0, 1, 1], [], []>} : vector<8x128xbf16>, vector<128x256xbf16>, vector<8x256xf32> -> vector<8x256xf32>
    %c0_17 = arith.constant 0 : index
    %c0_18 = arith.constant 0 : index
    %24 = vector.load %arg4[%c0_17, %c0_18] : memref<8x256xf32, #tpu.memory_space<vmem>>, vector<8x256xf32>
    %25 = arith.addf %23, %24 : vector<8x256xf32>
    %cst_19 = arith.constant 0.000000e+00 : f32
    %26 = vector.broadcast %cst_19 : f32 to vector<8x256xf32>
    %27 = arith.maximumf %25, %26 : vector<8x256xf32>
    %28 = arith.truncf %27 : vector<8x256xf32> to vector<8x256xbf16>
    %c0_20 = arith.constant 0 : index
    %c0_21 = arith.constant 0 : index
    %29 = vector.load %arg9[%c0_20, %c0_21] : memref<256x896xbf16, #tpu.memory_space<vmem>>, vector<256x896xbf16>
    %cst_22 = arith.constant dense<0.000000e+00> : vector<8x896xf32>
    %30 = tpu.matmul %28, %29, %cst_22 {dimension_numbers = #tpu.dot_dimension_numbers<[1], [0], [0], [1], [0, 0, 1, 1], [], []>} : vector<8x256xbf16>, vector<256x896xbf16>, vector<8x896xf32> -> vector<8x896xf32>
    %c0_23 = arith.constant 0 : index
    %c0_24 = arith.constant 0 : index
    %31 = vector.load %arg10[%c0_23, %c0_24] : memref<1x896xf32, #tpu.memory_space<vmem>>, vector<1x896xf32>
    %32 = vector.broadcast %31 : vector<1x896xf32> to vector<8x896xf32>
    %33 = arith.addf %30, %32 : vector<8x896xf32>
    %34 = arith.negf %33 : vector<8x896xf32>
    %35 = math.exp %34 : vector<8x896xf32>
    %cst_25 = arith.constant 1.000000e+00 : f32
    %36 = vector.broadcast %cst_25 : f32 to vector<8x896xf32>
    %37 = arith.addf %36, %35 : vector<8x896xf32>
    %38 = arith.divf %36, %37 : vector<8x896xf32>
    %c0_26 = arith.constant 0 : index
    %c0_27 = arith.constant 0 : index
    %39 = vector.load %arg11[%c0_26, %c0_27] : memref<8x896xf32, #tpu.memory_space<vmem>>, vector<8x896xf32>
    tpu.vector_store %arg11[%c0_26, %c0_27], %38 {strides = array<i32>} : memref<8x896xf32, #tpu.memory_space<vmem>>, vector<8x896xf32>,
    %c0_28 = arith.constant 0 : index
    %c0_29 = arith.constant 0 : index
    %40 = vector.load %arg12[%c0_28, %c0_29] : memref<8x128xf32, #tpu.memory_space<vmem>>, vector<8x128xf32>
    tpu.vector_store %arg12[%c0_28, %c0_29], %13 {strides = array<i32>} : memref<8x128xf32, #tpu.memory_space<vmem>>, vector<8x128xf32>,
    %c0_30 = arith.constant 0 : index
    %c0_31 = arith.constant 0 : index
    %41 = vector.load %arg13[%c0_30, %c0_31] : memref<8x128xf32, #tpu.memory_space<vmem>>, vector<8x128xf32>
    tpu.vector_store %arg13[%c0_30, %c0_31], %14 {strides = array<i32>} : memref<8x128xf32, #tpu.memory_space<vmem>>, vector<8x128xf32>,
    return
  }
  func.func @transform_0(%arg0: i32) -> (i32, i32) {
    %c0_i32 = arith.constant 0 : i32
    %c0_i32_0 = arith.constant 0 : i32
    return %arg0, %c0_i32 : i32, i32
  }
  func.func @transform_1(%arg0: i32) -> (i32, i32) {
    %c0_i32 = arith.constant 0 : i32
    %c0_i32_0 = arith.constant 0 : i32
    return %arg0, %c0_i32 : i32, i32
  }
  func.func @transform_2(%arg0: i32) -> (i32, i32) {
    %c0_i32 = arith.constant 0 : i32
    %c0_i32_0 = arith.constant 0 : i32
    return %arg0, %c0_i32 : i32, i32
  }
  func.func @transform_3(%arg0: i32) -> (i32, i32) {
    %c0_i32 = arith.constant 0 : i32
    %c0_i32_0 = arith.constant 0 : i32
    return %arg0, %c0_i32 : i32, i32
  }
  func.func @transform_4(%arg0: i32) -> (i32, i32) {
    %c0_i32 = arith.constant 0 : i32
    %c0_i32_0 = arith.constant 0 : i32
    %c0_i32_1 = arith.constant 0 : i32
    return %c0_i32, %c0_i32_0 : i32, i32
  }
  func.func @transform_5(%arg0: i32) -> (i32, i32) {
    %c0_i32 = arith.constant 0 : i32
    %c0_i32_0 = arith.constant 0 : i32
    %c0_i32_1 = arith.constant 0 : i32
    return %c0_i32, %c0_i32_0 : i32, i32
  }
  func.func @transform_6(%arg0: i32) -> (i32, i32) {
    %c0_i32 = arith.constant 0 : i32
    %c0_i32_0 = arith.constant 0 : i32
    %c0_i32_1 = arith.constant 0 : i32
    return %c0_i32, %c0_i32_0 : i32, i32
  }
  func.func @transform_7(%arg0: i32) -> (i32, i32) {
    %c0_i32 = arith.constant 0 : i32
    %c0_i32_0 = arith.constant 0 : i32
    %c0_i32_1 = arith.constant 0 : i32
    return %c0_i32, %c0_i32_0 : i32, i32
  }
  func.func @transform_8(%arg0: i32) -> (i32, i32) {
    %c0_i32 = arith.constant 0 : i32
    %c0_i32_0 = arith.constant 0 : i32
    %c0_i32_1 = arith.constant 0 : i32
    return %c0_i32, %c0_i32_0 : i32, i32
  }
  func.func @transform_9(%arg0: i32) -> (i32, i32) {
    %c0_i32 = arith.constant 0 : i32
    %c0_i32_0 = arith.constant 0 : i32
    %c0_i32_1 = arith.constant 0 : i32
    return %c0_i32, %c0_i32_0 : i32, i32
  }
  func.func @transform_10(%arg0: i32) -> (i32, i32) {
    %c0_i32 = arith.constant 0 : i32
    %c0_i32_0 = arith.constant 0 : i32
    return %arg0, %c0_i32 : i32, i32
  }
  func.func @transform_11(%arg0: i32) -> (i32, i32) {
    %c0_i32 = arith.constant 0 : i32
    %c0_i32_0 = arith.constant 0 : i32
    return %arg0, %c0_i32 : i32, i32
  }
  func.func @transform_12(%arg0: i32) -> (i32, i32) {
    %c0_i32 = arith.constant 0 : i32
    %c0_i32_0 = arith.constant 0 : i32
    return %arg0, %c0_i32 : i32, i32
  }
}

</mosaic_0001>

<bundles_post_ra>
// kernel: cvae_forward.1
= control target key start
LH: loop header
LB: loop body
LE: loop exit
PB: predicated region body
PF: predicated region fallthrough
CT: control target
= control target key end

     0   :  { %18 = vsyncpa [#allocation3], 0  ;;  %s3582_s0 = inlined_call_operand.vmem [shape: bf16[8,896], index: 0, kind: input, shape index: {}]   ;;  %s3583_s1 = inlined_call_operand.vmem [shape: f32[8,128], index: 1, kind: input, shape index: {}]   ;;  %s3584_s2 = inlined_call_operand.vmem [shape: f32[8,256], index: 2, kind: input, shape index: {}]   ;;  %s3585_s3 = inlined_call_operand.vmem [shape: f32[8,256], index: 3, kind: input, shape index: {}]   ;;  %s3586_s4 = inlined_call_operand.hbm [shape: bf16[896,256], index: 4, kind: input, shape index: {}]   ;;  %s3587_s5 = inlined_call_operand.vmem [shape: bf16[256,256], index: 5, kind: input, shape index: {}]   ;;  %s3588_s6 = inlined_call_operand.vmem [shape: f32[1,256], index: 6, kind: input, shape index: {}]   ;;  %s3589_s7 = inlined_call_operand.vmem [shape: bf16[128,256], index: 7, kind: input, shape index: {}]   ;;  %s3590_s8 = inlined_call_operand.hbm [shape: bf16[256,896], index: 8, kind: input, shape index: {}]   ;;  %s3591_s9 = inlined_call_operand.vmem [shape: f32[1,896], index: 9, kind: input, shape index: {}]   ;;  %s3592_s10 = inlined_call_operand.hbm [shape: f32[8,896], index: 10, kind: output, shape index: {0}]   ;;  %s3593_s11 = inlined_call_operand.hbm [shape: f32[8,128], index: 11, kind: output, shape index: {1}]   ;;  %s3594_s12 = inlined_call_operand.hbm [shape: f32[8,128], index: 12, kind: output, shape index: {2}]  }
   0x1   :  { %19 = vsyncpa [#allocation6], 0 }
   0x2   :  { %20 = vsyncpa [#allocation4], 0 }
   0x3   :  { %21 = vsyncpa [#allocation9], 0  ;;  %s3220_s21 = smov [#allocation2]   ;;  %s3102_s25 = scalar_lea.hbm %s3586_s4, 14336 }
   0x4   :  { %s35_s22 = sshll.u32 %s3220_s21, 4  ;;  %p3103_p0 = scmp.ne.s32.totalorder %s3586_s4, %s3102_s25  ;;  %s36_s22 = int_to_ptr.vmem [resolvable:$true] %s35_s22 }
   0x5   :  { %p3106_p1 = scmp.lt.u32.totalorder %s3102_s25, %s3586_s4 }
   0x7   :  { %p3108_p2 = pnand %p3106_p1, %p3103_p0 }
   0x9   :  { %3111 = shalt.err (!%p3108_p2)
}
   0xa   :  { %s3112_s30 = scalar_lea.vmem %s36_s22, 14336  ;;  %p3117_p4 = scmp.lt.s32.totalorder %s36_s22, %s36_s22 }
   0xb   :  { %p3113_p3 = scmp.ne.s32.totalorder %s36_s22, %s3112_s30  ;;  %p3118_p5 = scmp.lt.s32.totalorder %s3112_s30, %s3112_s30 }
   0xd   :  { %p3119_p6 = por %p3118_p5, %p3117_p4 }
   0xf   :  { %p3120_p7 = pnand %p3119_p6, %p3113_p3 }
  0x11   :  { %3123 = shalt.err (!%p3120_p7)
}
  0x12   :  { %s3221_s13 = smov 128   ;;  %s3222_s14 = smov 8  }
  0x13   :  { %41 = dma.hbm_to_vmem [thread:$0]  %s3586_s4, 14336, %s36_s22, [#allocation3], %s3221_s13, %s3221_s13, %s3222_s14  }
  0x14   :  { %s3223_s17 = smov [#allocation5]   ;;  %s3124_s21 = scalar_lea.hbm %s3590_s8, 14336 }
  0x15   :  { %s53_s18 = sshll.u32 %s3223_s17, 4  ;;  %p3125_p8 = scmp.ne.s32.totalorder %s3590_s8, %s3124_s21  ;;  %s54_s18 = int_to_ptr.vmem [resolvable:$true] %s53_s18 }
  0x16   :  { %p3128_p9 = scmp.lt.u32.totalorder %s3124_s21, %s3590_s8 }
  0x18   :  { %p3130_p10 = pnand %p3128_p9, %p3125_p8 }
  0x1a   :  { %3133 = shalt.err (!%p3130_p10)
}
  0x1b   :  { %s3134_s27 = scalar_lea.vmem %s54_s18, 14336  ;;  %p3139_p12 = scmp.lt.s32.totalorder %s54_s18, %s54_s18 }
  0x1c   :  { %p3135_p11 = scmp.ne.s32.totalorder %s54_s18, %s3134_s27  ;;  %p3140_p13 = scmp.lt.s32.totalorder %s3134_s27, %s3134_s27 }
  0x1e   :  { %p3141_p0 = por %p3140_p13, %p3139_p12 }
  0x20   :  { %p3142_p1 = pnand %p3141_p0, %p3135_p11 }
  0x22   :  { %3145 = shalt.err (!%p3142_p1)
}
  0x23   :  { %s3224_s4 = smov 448   ;;  %s3225_s22 = smov 28  }
  0x24   :  { %59 = dma.hbm_to_vmem [thread:$0]  %s3590_s8, 14336, %s54_s18, [#allocation6], %s3224_s4, %s3224_s4, %s3225_s22  }
  0x25   :  { %3212 = dma.done.wait [#allocation3], 14336  }
  0x26   :  { %3213 = vsyncadd [#allocation3], 4294952960 }
  0x27   :  { %3214 = dma.done.wait [#allocation6], 14336  }
  0x28   :  { %3215 = vsyncadd [#allocation6], 4294952960  ;;  %v2665_v0 = vld [vmem:[#allocation2 + $0x4] ss:$8 sps:$4 sm:$0xff]   ;;  %v2667_v1 = vld [vmem:[#allocation2] ss:$8 sps:$4 sm:$0xff]  }
  0x29   :  { %772 = vmatprep.subr.bf16.mxu0 %v2665_v0  ;;  %v2668_v2 = vld [vmem:[#allocation2 + $0x14] ss:$8 sps:$4 sm:$0xff]   ;;  %v2670_v3 = vld [vmem:[#allocation2 + $0x10] ss:$8 sps:$4 sm:$0xff]   ;;  %v2671_v4 = vld [vmem:[#allocation2 + $0x24] ss:$8 sps:$4 sm:$0xff]  }
  0x2a   :  { %773 = vmatpush1.bf16.msra.mxu0 %v2667_v1  ;;  %v2673_v5 = vld [vmem:[#allocation2 + $0x20] ss:$8 sps:$4 sm:$0xff]   ;;  %v2674_v6 = vld [vmem:[#allocation2 + $0x34] ss:$8 sps:$4 sm:$0xff]   ;;  %v2676_v7 = vld [vmem:[#allocation2 + $0x30] ss:$8 sps:$4 sm:$0xff]  }
  0x2b   :  { %774 = vmatprep.subr.bf16.mxu0 %v2668_v2  ;;  %v2677_v8 = vld [vmem:[#allocation2 + $0x44] ss:$8 sps:$4 sm:$0xff]   ;;  %v2679_v9 = vld [vmem:[#allocation2 + $0x40] ss:$8 sps:$4 sm:$0xff]   ;;  %v2680_v10 = vld [vmem:[#allocation2 + $0x54] ss:$8 sps:$4 sm:$0xff]  }
  0x2c   :  { %v2682_v11 = vld [vmem:[#allocation2 + $0x50] ss:$8 sps:$4 sm:$0xff]   ;;  %v2683_v12 = vld [vmem:[#allocation2 + $0x64] ss:$8 sps:$4 sm:$0xff]   ;;  %v2685_v15 = vld [vmem:[#allocation2 + $0x60] ss:$8 sps:$4 sm:$0xff]  }
  0x2d   :  { %v69_v13 = vld [vmem:[%s3582_s0] sm:$0xff]  ;;  %v2686_v16 = vld [vmem:[#allocation2 + $0x74] ss:$8 sps:$4 sm:$0xff]   ;;  %v2688_v17 = vld [vmem:[#allocation2 + $0x70] ss:$8 sps:$4 sm:$0xff]   ;;  %s3227_s19 = smov [#allocation8]  }
  0x2e   :  { %775 = vmatpush1.bf16.msra.mxu0 %v2670_v3  ;;  %v2334_v14 = vcombine.high %v69_v13, %v69_v13  ;;  %v2689_v18 = vld [vmem:[#allocation2 + $0x84] ss:$8 sps:$4 sm:$0xff]   ;;  %v2691_v19 = vld [vmem:[#allocation2 + $0x80] ss:$8 sps:$4 sm:$0xff]   ;;  %v2692_v20 = vld [vmem:[#allocation2 + $0x94] ss:$8 sps:$4 sm:$0xff]   ;;  %v2333_v36 = vcombine.low %v69_v13, %v69_v13 }
  0x2f   :  { %776 = vmatprep.subr.bf16.mxu0 %v2671_v4  ;;  %v2694_v21 = vld [vmem:[#allocation2 + $0x90] ss:$8 sps:$4 sm:$0xff]   ;;  %v2695_v22 = vld [vmem:[#allocation2 + $0xa4] ss:$8 sps:$4 sm:$0xff]   ;;  %v2697_v23 = vld [vmem:[#allocation2 + $0xa0] ss:$8 sps:$4 sm:$0xff]  }
  0x30   :  { %804 = vmatprep.mubr.bf16.mxu0 %v2334_v14  ;;  %v2698_v24 = vld [vmem:[#allocation2 + $0xb4] ss:$8 sps:$4 sm:$0xff]   ;;  %v2700_v25 = vld [vmem:[#allocation2 + $0xb0] ss:$8 sps:$4 sm:$0xff]   ;;  %v2701_v26 = vld [vmem:[#allocation2 + $0xc4] ss:$8 sps:$4 sm:$0xff]  }
  0x31   :  { %v2703_v27 = vld [vmem:[#allocation2 + $0xc0] ss:$8 sps:$4 sm:$0xff]   ;;  %v2704_v28 = vld [vmem:[#allocation2 + $0xd4] ss:$8 sps:$4 sm:$0xff]   ;;  %v2706_v29 = vld [vmem:[#allocation2 + $0xd0] ss:$8 sps:$4 sm:$0xff]  }
  0x32   :  { %777 = vmatpush1.bf16.msra.mxu0 %v2673_v5  ;;  %v2707_v30 = vld [vmem:[#allocation2 + $0xe4] ss:$8 sps:$4 sm:$0xff]   ;;  %v2709_v31 = vld [vmem:[#allocation2 + $0xe0] ss:$8 sps:$4 sm:$0xff]   ;;  %v2710_v32 = vld [vmem:[#allocation2 + $0xf4] ss:$8 sps:$4 sm:$0xff]  }
  0x33   :  { %778 = vmatprep.subr.bf16.mxu0 %v2674_v6  ;;  %v2712_v33 = vld [vmem:[#allocation2 + $0xf0] ss:$8 sps:$4 sm:$0xff]   ;;  %v2717_v34 = vld [vmem:[#allocation2 + $0x104] ss:$8 sps:$4 sm:$0xff]   ;;  %v2715_v37 = vld [vmem:[#allocation2 + $0x100] ss:$8 sps:$4 sm:$0xff]  }
  0x34   :  { %v3325_v35 = vld [vmem:[%s3582_s0 + $0x8] sm:$0xff]  ;;  %v2720_v39 = vld [vmem:[#allocation2 + $0x114] ss:$8 sps:$4 sm:$0xff]   ;;  %v2718_v40 = vld [vmem:[#allocation2 + $0x110] ss:$8 sps:$4 sm:$0xff]   ;;  %s2306_s20 = sshll.u32 %s3227_s19, 4  ;;  %s2307_s20 = int_to_ptr.vmem [resolvable:$true] %s2306_s20 }
  0x35   :  { %v2336_v38 = vcombine.high %v3325_v35, %v3325_v35  ;;  %v2723_v41 = vld [vmem:[#allocation2 + $0x124] ss:$8 sps:$4 sm:$0xff]   ;;  %v2721_v42 = vld [vmem:[#allocation2 + $0x120] ss:$8 sps:$4 sm:$0xff]   ;;  %v2726_v43 = vld [vmem:[#allocation2 + $0x134] ss:$8 sps:$4 sm:$0xff]   ;;  %p3151_p3 = scmp.lt.s32.totalorder %s2307_s20, %s2307_s20 }
  0x36   :  { %779 = vmatpush1.bf16.msra.mxu0 %v2676_v7  ;;  %v2724_v44 = vld [vmem:[#allocation2 + $0x130] ss:$8 sps:$4 sm:$0xff]   ;;  %v2729_v45 = vld [vmem:[#allocation2 + $0x144] ss:$8 sps:$4 sm:$0xff]   ;;  %v2727_v46 = vld [vmem:[#allocation2 + $0x140] ss:$8 sps:$4 sm:$0xff]  }
  0x37   :  { %780 = vmatprep.subr.bf16.mxu0 %v2677_v8  ;;  %v2732_v47 = vld [vmem:[#allocation2 + $0x154] ss:$8 sps:$4 sm:$0xff]   ;;  %v2730_v48 = vld [vmem:[#allocation2 + $0x150] ss:$8 sps:$4 sm:$0xff]   ;;  %v2735_v49 = vld [vmem:[#allocation2 + $0x164] ss:$8 sps:$4 sm:$0xff]  }
  0x38   :  { %v2733_v50 = vld [vmem:[#allocation2 + $0x160] ss:$8 sps:$4 sm:$0xff]   ;;  %v2738_v51 = vld [vmem:[#allocation2 + $0x174] ss:$8 sps:$4 sm:$0xff]   ;;  %v2736_v52 = vld [vmem:[#allocation2 + $0x170] ss:$8 sps:$4 sm:$0xff]  }
  0x39   :  { %v2741_v53 = vld [vmem:[#allocation2 + $0x184] ss:$8 sps:$4 sm:$0xff]   ;;  %v2739_v54 = vld [vmem:[#allocation2 + $0x180] ss:$8 sps:$4 sm:$0xff]   ;;  %v2744_v55 = vld [vmem:[#allocation2 + $0x194] ss:$8 sps:$4 sm:$0xff]  }
  0x3a   :  { %781 = vmatpush1.bf16.msra.mxu0 %v2679_v9  ;;  %v2840_v56 = vld [vmem:[%s3587_s5 + $0x4] ss:$8 sps:$4 sm:$0xff]   ;;  %v2842_v57 = vld [vmem:[%s3587_s5] ss:$8 sps:$4 sm:$0xff]   ;;  %v2843_v58 = vld [vmem:[%s3587_s5 + $0x14] ss:$8 sps:$4 sm:$0xff]  }
  0x3b   :  { %782 = vmatprep.subr.bf16.mxu0 %v2680_v10  ;;  %v2742_v59 = vld [vmem:[#allocation2 + $0x190] ss:$8 sps:$4 sm:$0xff]   ;;  %v2747_v60 = vld [vmem:[#allocation2 + $0x1a4] ss:$8 sps:$4 sm:$0xff]   ;;  %1144 = vmatprep.subr.bf16.mxu1 %v2840_v56  ;;  %v2745_v63 = vld [vmem:[#allocation2 + $0x1a0] ss:$8 sps:$4 sm:$0xff]  }
  0x3c   :  { %1145 = vmatpush1.bf16.msra.mxu1 %v2842_v57  ;;  %v2845_v61 = vld [vmem:[%s3587_s5 + $0x10] ss:$8 sps:$4 sm:$0xff]   ;;  %v2846_v62 = vld [vmem:[%s3587_s5 + $0x24] ss:$8 sps:$4 sm:$0xff]   ;;  %v2750_v0 = vld [vmem:[#allocation2 + $0x1b4] ss:$8 sps:$4 sm:$0xff]  }
  0x3d   :  { %1146 = vmatprep.subr.bf16.mxu1 %v2843_v58  ;;  %v2848_v1 = vld [vmem:[%s3587_s5 + $0x20] ss:$8 sps:$4 sm:$0xff]   ;;  %v2748_v2 = vld [vmem:[#allocation2 + $0x1b0] ss:$8 sps:$4 sm:$0xff]   ;;  %v2849_v3 = vld [vmem:[%s3587_s5 + $0x34] ss:$8 sps:$4 sm:$0xff]  }
  0x3e   :  { %783 = vmatpush1.bf16.msra.mxu0 %v2682_v11  ;;  %v2753_v4 = vld [vmem:[#allocation2 + $0x1c4] ss:$8 sps:$4 sm:$0xff]   ;;  %v2851_v5 = vld [vmem:[%s3587_s5 + $0x30] ss:$8 sps:$4 sm:$0xff]   ;;  %v2751_v7 = vld [vmem:[#allocation2 + $0x1c0] ss:$8 sps:$4 sm:$0xff]  }
  0x3f   :  { %784 = vmatprep.subr.bf16.mxu0 %v2683_v12  ;;  %v2852_v6 = vld [vmem:[%s3587_s5 + $0x44] ss:$8 sps:$4 sm:$0xff]   ;;  %v2756_v8 = vld [vmem:[#allocation2 + $0x1d4] ss:$8 sps:$4 sm:$0xff]   ;;  %v2854_v9 = vld [vmem:[%s3587_s5 + $0x40] ss:$8 sps:$4 sm:$0xff]  }
  0x40   :  { %1147 = vmatpush1.bf16.msra.mxu1 %v2845_v61  ;;  %v2855_v10 = vld [vmem:[%s3587_s5 + $0x54] ss:$8 sps:$4 sm:$0xff]   ;;  %v2754_v11 = vld [vmem:[#allocation2 + $0x1d0] ss:$8 sps:$4 sm:$0xff]   ;;  %v2759_v12 = vld [vmem:[#allocation2 + $0x1e4] ss:$8 sps:$4 sm:$0xff]  }
  0x41   :  { %1148 = vmatprep.subr.bf16.mxu1 %v2846_v62  ;;  %v2857_v13 = vld [vmem:[%s3587_s5 + $0x50] ss:$8 sps:$4 sm:$0xff]   ;;  %v2858_v14 = vld [vmem:[%s3587_s5 + $0x64] ss:$8 sps:$4 sm:$0xff]   ;;  %v2795_v57 = vld [vmem:[#allocation2 + $0x2a0] ss:$8 sps:$4 sm:$0xff]  }
  0x42   :  { %785 = vmatpush1.bf16.msra.mxu0 %v2685_v15  ;;  %v2757_v15 = vld [vmem:[#allocation2 + $0x1e0] ss:$8 sps:$4 sm:$0xff]   ;;  %v2797_v56 = vld [vmem:[#allocation2 + $0x2a4] ss:$8 sps:$4 sm:$0xff]   ;;  %v2800_v58 = vld [vmem:[#allocation2 + $0x2b4] ss:$8 sps:$4 sm:$0xff]  }
  0x43   :  { %786 = vmatprep.subr.bf16.mxu0 %v2686_v16  ;;  %v2762_v16 = vld [vmem:[#allocation2 + $0x1f4] ss:$8 sps:$4 sm:$0xff]   ;;  %v2801_v61 = vld [vmem:[#allocation2 + $0x2c0] ss:$8 sps:$4 sm:$0xff]  }
  0x44   :  { %1149 = vmatpush1.bf16.msra.mxu1 %v2848_v1  ;;  %v2806_v62 = vld [vmem:[#allocation2 + $0x2d4] ss:$8 sps:$4 sm:$0xff]   ;;  %v2807_v1 = vld [vmem:[#allocation2 + $0x2e0] ss:$8 sps:$4 sm:$0xff]  }
  0x45   :  { %1150 = vmatprep.subr.bf16.mxu1 %v2849_v3  ;;  %v2810_v3 = vld [vmem:[#allocation2 + $0x2f0] ss:$8 sps:$4 sm:$0xff]  }
  0x46   :  { %787 = vmatpush1.bf16.msra.mxu0 %v2688_v17  ;;  %v2860_v17 = vld [vmem:[%s3587_s5 + $0x60] ss:$8 sps:$4 sm:$0xff]  }
  0x47   :  { %788 = vmatprep.subr.bf16.mxu0 %v2689_v18  ;;  %v2861_v18 = vld [vmem:[%s3587_s5 + $0x74] ss:$8 sps:$4 sm:$0xff]  }
  0x48   :  { %1151 = vmatpush1.bf16.msra.mxu1 %v2851_v5 }
  0x49   :  { %1152 = vmatprep.subr.bf16.mxu1 %v2852_v6  ;;  %v2815_v6 = vld [vmem:[#allocation2 + $0x300] ss:$8 sps:$4 sm:$0xff]  }
  0x4a   :  { %789 = vmatpush1.bf16.msra.mxu0 %v2691_v19  ;;  %v2760_v19 = vld [vmem:[#allocation2 + $0x1f0] ss:$8 sps:$4 sm:$0xff]  }
  0x4b   :  { %790 = vmatprep.subr.bf16.mxu0 %v2692_v20  ;;  %v2767_v20 = vld [vmem:[#allocation2 + $0x204] ss:$8 sps:$4 sm:$0xff]  }
  0x4c   :  { %1153 = vmatpush1.bf16.msra.mxu1 %v2854_v9  ;;  %v3226_v9 = vmov 0  }
  0x4d   :  { %1154 = vmatprep.subr.bf16.mxu1 %v2855_v10  ;;  %v2823_v10 = vld [vmem:[#allocation2 + $0x324] ss:$8 sps:$4 sm:$0xff]  }
  0x4e   :  { %791 = vmatpush1.bf16.msra.mxu0 %v2694_v21  ;;  %v3377_v21 = vld [vmem:[%s3582_s0 + $0x10] sm:$0xff] }
  0x4f   :  { %792 = vmatprep.subr.bf16.mxu0 %v2695_v22  ;;  %v2863_v22 = vld [vmem:[%s3587_s5 + $0x70] ss:$8 sps:$4 sm:$0xff]   ;;  %v2337_v5 = vcombine.low %v3377_v21, %v3377_v21 }
  0x50   :  { %1155 = vmatpush1.bf16.msra.mxu1 %v2857_v13  ;;  %v2824_v13 = vld [vmem:[#allocation2 + $0x330] ss:$8 sps:$4 sm:$0xff]  }
  0x51   :  { %1156 = vmatprep.subr.bf16.mxu1 %v2858_v14  ;;  %v2829_v14 = vld [vmem:[#allocation2 + $0x344] ss:$8 sps:$4 sm:$0xff]  }
  0x52   :  { %793 = vmatpush1.bf16.msra.mxu0 %v2697_v23  ;;  %v2864_v23 = vld [vmem:[%s3587_s5 + $0x84] ss:$8 sps:$4 sm:$0xff]  }
  0x53   :  { %794 = vmatprep.subr.bf16.mxu0 %v2698_v24  ;;  %v2765_v24 = vld [vmem:[#allocation2 + $0x200] ss:$8 sps:$4 sm:$0xff]  }
  0x54   :  { %1157 = vmatpush1.bf16.msra.mxu1 %v2860_v17  ;;  %v2830_v17 = vld [vmem:[#allocation2 + $0x350] ss:$8 sps:$4 sm:$0xff]  }
  0x55   :  { %1158 = vmatprep.subr.bf16.mxu1 %v2861_v18  ;;  %v2835_v18 = vld [vmem:[#allocation2 + $0x364] ss:$8 sps:$4 sm:$0xff]  }
  0x56   :  { %795 = vmatpush1.bf16.msra.mxu0 %v2700_v25  ;;  %v2335_v25 = vcombine.low %v3325_v35, %v3325_v35  ;;  %v2776_v35 = vld [vmem:[#allocation2 + $0x234] ss:$8 sps:$4 sm:$0xff]  }
  0x57   :  { %796 = vmatprep.subr.bf16.mxu0 %v2701_v26  ;;  %v2770_v26 = vld [vmem:[#allocation2 + $0x214] ss:$8 sps:$4 sm:$0xff]  }
  0x58   :  { %1159 = vmatpush1.bf16.msra.mxu1 %v2863_v22  ;;  %v2839_v22 = vld [vmem:[%s3582_s0 + $0x18] ss:$0 sps:$4 sm:$0xff]  }
  0x59   :  { %1160 = vmatprep.subr.bf16.mxu1 %v2864_v23  ;;  %v2882_v23 = vld [vmem:[%s3587_s5 + $0xe4] ss:$8 sps:$4 sm:$0xff]  }
  0x5a   :  { %797 = vmatpush1.bf16.msra.mxu0 %v2703_v27  ;;  %v2338_v27 = vcombine.high %v3377_v21, %v3377_v21  ;;  %v2836_v21 = vld [vmem:[#allocation2 + $0x370] ss:$8 sps:$4 sm:$0xff]  }
  0x5b   :  { %798 = vmatprep.subr.bf16.mxu0 %v2704_v28  ;;  %v2866_v28 = vld [vmem:[%s3587_s5 + $0x80] ss:$8 sps:$4 sm:$0xff]  }
  0x5c   :  { %1161 = vmatpush1.bf16.msra.mxu1 %v2866_v28  ;;  %v185_v28 = vld [vmem:[%s3584_s2] sm:$0xff] }
  0x5e   :  { %799 = vmatpush1.bf16.msra.mxu0 %v2706_v29  ;;  %v2867_v29 = vld [vmem:[%s3587_s5 + $0x94] ss:$8 sps:$4 sm:$0xff]  }
  0x5f   :  { %800 = vmatprep.subr.bf16.mxu0 %v2707_v30  ;;  %v2768_v30 = vld [vmem:[#allocation2 + $0x210] ss:$8 sps:$4 sm:$0xff]   ;;  %1162 = vmatprep.subr.bf16.mxu1 %v2867_v29  ;;  %v186_v29 = vld [vmem:[%s3584_s2 + $0x8] sm:$0xff] }
  0x62   :  { %801 = vmatpush1.bf16.msra.mxu0 %v2709_v31  ;;  %v2773_v31 = vld [vmem:[#allocation2 + $0x224] ss:$8 sps:$4 sm:$0xff]  }
  0x63   :  { %802 = vmatprep.subr.bf16.mxu0 %v2710_v32  ;;  %v2869_v32 = vld [vmem:[%s3587_s5 + $0x90] ss:$8 sps:$4 sm:$0xff]  }
  0x64   :  { %1163 = vmatpush1.bf16.msra.mxu1 %v2869_v32 }
  0x66   :  { %803 = vmatpush1.bf16.msra.mxu0 %v2712_v33  ;;  %v2870_v33 = vld [vmem:[%s3587_s5 + $0xa4] ss:$8 sps:$4 sm:$0xff]  }
  0x67   :  { %813 = vmatprep.subr.bf16.mxu0 %v2717_v34  ;;  %v2771_v34 = vld [vmem:[#allocation2 + $0x220] ss:$8 sps:$4 sm:$0xff]   ;;  %1164 = vmatprep.subr.bf16.mxu1 %v2870_v33 }
  0x69   :  { %805 = vmatmul.mubr.bf16.vlgmr.msra.gmra.mrb[0].mxu0 %v2333_v36  ;;  %v2872_v36 = vld [vmem:[%s3587_s5 + $0xa0] ss:$8 sps:$4 sm:$0xff]  }
  0x6a   :  { %814 = vmatpush1.bf16.msra.mxu0 %v2715_v37  ;;  %845 = vmatprep.mubr.bf16.mxu0 %v2336_v38  ;;  %v2873_v37 = vld [vmem:[%s3587_s5 + $0xb4] ss:$8 sps:$4 sm:$0xff]   ;;  %v2774_v38 = vld [vmem:[#allocation2 + $0x230] ss:$8 sps:$4 sm:$0xff]  }
  0x6b   :  { %815 = vmatprep.subr.bf16.mxu0 %v2720_v39  ;;  %v2779_v39 = vld [vmem:[#allocation2 + $0x244] ss:$8 sps:$4 sm:$0xff]   ;;  %1165 = vmatpush1.bf16.msra.mxu1 %v2872_v36 }
  0x6c   :  { %1166 = vmatprep.subr.bf16.mxu1 %v2873_v37 }
  0x6e   :  { %816 = vmatpush1.bf16.msra.mxu0 %v2718_v40  ;;  %v2875_v40 = vld [vmem:[%s3587_s5 + $0xb0] ss:$8 sps:$4 sm:$0xff]  }
  0x6f   :  { %817 = vmatprep.subr.bf16.mxu0 %v2723_v41  ;;  %v2876_v41 = vld [vmem:[%s3587_s5 + $0xc4] ss:$8 sps:$4 sm:$0xff]   ;;  %1167 = vmatpush1.bf16.msra.mxu1 %v2875_v40 }
  0x70   :  { %1168 = vmatprep.subr.bf16.mxu1 %v2876_v41  ;;  %v2893_v41 = vld [vmem:[%s3589_s7 + $0x14] ss:$8 sps:$4 sm:$0xff]  }
  0x72   :  { %818 = vmatpush1.bf16.msra.mxu0 %v2721_v42  ;;  %v2777_v42 = vld [vmem:[#allocation2 + $0x240] ss:$8 sps:$4 sm:$0xff]  }
  0x73   :  { %819 = vmatprep.subr.bf16.mxu0 %v2726_v43  ;;  %v2782_v43 = vld [vmem:[#allocation2 + $0x254] ss:$8 sps:$4 sm:$0xff]  }
  0x76   :  { %820 = vmatpush1.bf16.msra.mxu0 %v2724_v44  ;;  %v2878_v44 = vld [vmem:[%s3587_s5 + $0xc0] ss:$8 sps:$4 sm:$0xff]  }
  0x77   :  { %821 = vmatprep.subr.bf16.mxu0 %v2729_v45  ;;  %v2879_v45 = vld [vmem:[%s3587_s5 + $0xd4] ss:$8 sps:$4 sm:$0xff]   ;;  %1169 = vmatpush1.bf16.msra.mxu1 %v2878_v44  ;;  %v2894_v44 = vld [vmem:[%s3589_s7 + $0x20] ss:$8 sps:$4 sm:$0xff]  }
  0x78   :  { %1170 = vmatprep.subr.bf16.mxu1 %v2879_v45  ;;  %v2899_v45 = vld [vmem:[%s3589_s7 + $0x34] ss:$8 sps:$4 sm:$0xff]  }
  0x7a   :  { %822 = vmatpush1.bf16.msra.mxu0 %v2727_v46  ;;  %v2780_v46 = vld [vmem:[#allocation2 + $0x250] ss:$8 sps:$4 sm:$0xff]  }
  0x7b   :  { %823 = vmatprep.subr.bf16.mxu0 %v2732_v47  ;;  %v2785_v47 = vld [vmem:[#allocation2 + $0x264] ss:$8 sps:$4 sm:$0xff]  }
  0x7e   :  { %824 = vmatpush1.bf16.msra.mxu0 %v2730_v48  ;;  %v2881_v48 = vld [vmem:[%s3587_s5 + $0xd0] ss:$8 sps:$4 sm:$0xff]  }
  0x7f   :  { %825 = vmatprep.subr.bf16.mxu0 %v2735_v49  ;;  %v2783_v49 = vld [vmem:[#allocation2 + $0x260] ss:$8 sps:$4 sm:$0xff]   ;;  %1171 = vmatpush1.bf16.msra.mxu1 %v2881_v48 }
  0x80   :  { %1172 = vmatprep.subr.bf16.mxu1 %v2882_v23  ;;  %v2900_v48 = vld [vmem:[%s3589_s7 + $0x40] ss:$8 sps:$4 sm:$0xff]  }
  0x81   :  { %v972_v23 = vld [vmem:[%s3588_s6] sm:$0x3] }
  0x82   :  { %826 = vmatpush1.bf16.msra.mxu0 %v2733_v50  ;;  %v2788_v50 = vld [vmem:[#allocation2 + $0x274] ss:$8 sps:$4 sm:$0xff]  }
  0x83   :  { %827 = vmatprep.subr.bf16.mxu0 %v2738_v51  ;;  %v2786_v51 = vld [vmem:[#allocation2 + $0x270] ss:$8 sps:$4 sm:$0xff]  }
  0x86   :  { %828 = vmatpush1.bf16.msra.mxu0 %v2736_v52  ;;  %v2791_v52 = vld [vmem:[#allocation2 + $0x284] ss:$8 sps:$4 sm:$0xff]  }
  0x87   :  { %829 = vmatprep.subr.bf16.mxu0 %v2741_v53  ;;  %v2789_v53 = vld [vmem:[#allocation2 + $0x280] ss:$8 sps:$4 sm:$0xff]  }
  0x8a   :  { %830 = vmatpush1.bf16.msra.mxu0 %v2739_v54  ;;  %v2794_v54 = vld [vmem:[#allocation2 + $0x294] ss:$8 sps:$4 sm:$0xff]  }
  0x8b   :  { %831 = vmatprep.subr.bf16.mxu0 %v2744_v55  ;;  %v2792_v55 = vld [vmem:[#allocation2 + $0x290] ss:$8 sps:$4 sm:$0xff]  }
  0x8e   :  { %832 = vmatpush1.bf16.msra.mxu0 %v2742_v59  ;;  %v2798_v59 = vld [vmem:[#allocation2 + $0x2b0] ss:$8 sps:$4 sm:$0xff]  }
  0x8f   :  { %833 = vmatprep.subr.bf16.mxu0 %v2747_v60  ;;  %v2803_v60 = vld [vmem:[#allocation2 + $0x2c4] ss:$8 sps:$4 sm:$0xff]  }
  0x92   :  { %834 = vmatpush1.bf16.msra.mxu0 %v2745_v63  ;;  %v2804_v63 = vld [vmem:[#allocation2 + $0x2d0] ss:$8 sps:$4 sm:$0xff]  }
  0x93   :  { %835 = vmatprep.subr.bf16.mxu0 %v2750_v0  ;;  %v2809_v0 = vld [vmem:[#allocation2 + $0x2e4] ss:$8 sps:$4 sm:$0xff]  }
  0x96   :  { %836 = vmatpush1.bf16.msra.mxu0 %v2748_v2  ;;  %v2812_v2 = vld [vmem:[#allocation2 + $0x2f4] ss:$8 sps:$4 sm:$0xff]  }
  0x97   :  { %837 = vmatprep.subr.bf16.mxu0 %v2753_v4  ;;  %v2817_v4 = vld [vmem:[#allocation2 + $0x304] ss:$8 sps:$4 sm:$0xff]  }
  0x9a   :  { %838 = vmatpush1.bf16.msra.mxu0 %v2751_v7  ;;  %v2820_v7 = vld [vmem:[#allocation2 + $0x314] ss:$8 sps:$4 sm:$0xff]  }
  0x9b   :  { %839 = vmatprep.subr.bf16.mxu0 %v2756_v8  ;;  %v2818_v8 = vld [vmem:[#allocation2 + $0x310] ss:$8 sps:$4 sm:$0xff]  }
  0x9e   :  { %840 = vmatpush1.bf16.msra.mxu0 %v2754_v11  ;;  %v2821_v11 = vld [vmem:[#allocation2 + $0x320] ss:$8 sps:$4 sm:$0xff]  }
  0x9f   :  { %841 = vmatprep.subr.bf16.mxu0 %v2759_v12  ;;  %v2826_v12 = vld [vmem:[#allocation2 + $0x334] ss:$8 sps:$4 sm:$0xff]  }
  0xa2   :  { %842 = vmatpush1.bf16.msra.mxu0 %v2757_v15  ;;  %v2827_v15 = vld [vmem:[#allocation2 + $0x340] ss:$8 sps:$4 sm:$0xff]  }
  0xa3   :  { %843 = vmatprep.subr.bf16.mxu0 %v2762_v16  ;;  %v2832_v16 = vld [vmem:[#allocation2 + $0x354] ss:$8 sps:$4 sm:$0xff]  }
  0xa6   :  { %844 = vmatpush1.bf16.msra.mxu0 %v2760_v19  ;;  %v2833_v19 = vld [vmem:[#allocation2 + $0x360] ss:$8 sps:$4 sm:$0xff]  }
  0xa7   :  { %854 = vmatprep.subr.bf16.mxu0 %v2767_v20  ;;  %v2838_v20 = vld [vmem:[#allocation2 + $0x374] ss:$8 sps:$4 sm:$0xff]  }
  0xa9   :  { %846 = vmatmul.mubr.bf16.vlgmr.msra.gmra.mrb[0].mxu0 %v2335_v25  ;;  %v2885_v25 = vld [vmem:[%s3587_s5 + $0xf4] ss:$8 sps:$4 sm:$0xff]  }
  0xaa   :  { %855 = vmatpush1.bf16.msra.mxu0 %v2765_v24  ;;  %886 = vmatprep.mubr.bf16.mxu0 %v2338_v27  ;;  %v2884_v24 = vld [vmem:[%s3587_s5 + $0xe0] ss:$8 sps:$4 sm:$0xff]   ;;  %v2890_v27 = vld [vmem:[%s3589_s7 + $0x4] ss:$8 sps:$4 sm:$0xff]  }
  0xab   :  { %856 = vmatprep.subr.bf16.mxu0 %v2770_v26  ;;  %1173 = vmatpush1.bf16.msra.mxu1 %v2884_v24  ;;  %v2887_v26 = vld [vmem:[%s3587_s5 + $0xf0] ss:$8 sps:$4 sm:$0xff]  }
  0xac   :  { %1174 = vmatprep.subr.bf16.mxu1 %v2885_v25 }
  0xae   :  { %857 = vmatpush1.bf16.msra.mxu0 %v2768_v30 }
  0xaf   :  { %858 = vmatprep.subr.bf16.mxu0 %v2773_v31  ;;  %1175 = vmatpush1.bf16.msra.mxu1 %v2887_v26 }
  0xb0   :  { %1290 = vmatprep.subr.bf16.mxu1 %v2890_v27 }
  0xb2   :  { %859 = vmatpush1.bf16.msra.mxu0 %v2771_v34 }
  0xb3   :  { %860 = vmatprep.subr.bf16.mxu0 %v2776_v35 }
  0xb6   :  { %861 = vmatpush1.bf16.msra.mxu0 %v2774_v38 }
  0xb7   :  { %862 = vmatprep.subr.bf16.mxu0 %v2779_v39  ;;  %v2888_v39 = vld [vmem:[%s3589_s7] ss:$8 sps:$4 sm:$0xff]  }
  0xba   :  { %863 = vmatpush1.bf16.msra.mxu0 %v2777_v42  ;;  %v2891_v42 = vld [vmem:[%s3589_s7 + $0x10] ss:$8 sps:$4 sm:$0xff]  }
  0xbb   :  { %864 = vmatprep.subr.bf16.mxu0 %v2782_v43  ;;  %v2896_v43 = vld [vmem:[%s3589_s7 + $0x24] ss:$8 sps:$4 sm:$0xff]  }
  0xbe   :  { %865 = vmatpush1.bf16.msra.mxu0 %v2780_v46  ;;  %v2897_v46 = vld [vmem:[%s3589_s7 + $0x30] ss:$8 sps:$4 sm:$0xff]  }
  0xbf   :  { %866 = vmatprep.subr.bf16.mxu0 %v2785_v47  ;;  %v2902_v47 = vld [vmem:[%s3589_s7 + $0x44] ss:$8 sps:$4 sm:$0xff]  }
  0xc2   :  { %867 = vmatpush1.bf16.msra.mxu0 %v2783_v49  ;;  %v2905_v49 = vld [vmem:[%s3589_s7 + $0x54] ss:$8 sps:$4 sm:$0xff]  }
  0xc3   :  { %868 = vmatprep.subr.bf16.mxu0 %v2788_v50  ;;  %v2903_v50 = vld [vmem:[%s3589_s7 + $0x50] ss:$8 sps:$4 sm:$0xff]  }
  0xc6   :  { %869 = vmatpush1.bf16.msra.mxu0 %v2786_v51  ;;  %v2908_v51 = vld [vmem:[%s3589_s7 + $0x64] ss:$8 sps:$4 sm:$0xff]  }
  0xc7   :  { %870 = vmatprep.subr.bf16.mxu0 %v2791_v52  ;;  %v2906_v52 = vld [vmem:[%s3589_s7 + $0x60] ss:$8 sps:$4 sm:$0xff]  }
  0xca   :  { %871 = vmatpush1.bf16.msra.mxu0 %v2789_v53  ;;  %v2911_v53 = vld [vmem:[%s3589_s7 + $0x74] ss:$8 sps:$4 sm:$0xff]  }
  0xcb   :  { %872 = vmatprep.subr.bf16.mxu0 %v2794_v54  ;;  %v2909_v54 = vld [vmem:[%s3589_s7 + $0x70] ss:$8 sps:$4 sm:$0xff]  }
  0xce   :  { %873 = vmatpush1.bf16.msra.mxu0 %v2792_v55  ;;  %v2914_v55 = vld [vmem:[#allocation5 + $0x4] ss:$28 sps:$4 sm:$0xff]  }
  0xcf   :  { %874 = vmatprep.subr.bf16.mxu0 %v2797_v56  ;;  %v2915_v56 = vld [vmem:[#allocation5 + $0x10] ss:$28 sps:$4 sm:$0xff]  }
  0xd2   :  { %875 = vmatpush1.bf16.msra.mxu0 %v2795_v57  ;;  %v2917_v57 = vld [vmem:[#allocation5 + $0x14] ss:$28 sps:$4 sm:$0xff]  }
  0xd3   :  { %876 = vmatprep.subr.bf16.mxu0 %v2800_v58  ;;  %v2921_v58 = vld [vmem:[#allocation5 + $0x48] ss:$28 sps:$4 sm:$0xff]  }
  0xd6   :  { %877 = vmatpush1.bf16.msra.mxu0 %v2798_v59  ;;  %v2923_v59 = vld [vmem:[#allocation5 + $0x4c] ss:$28 sps:$4 sm:$0xff]  }
  0xd7   :  { %878 = vmatprep.subr.bf16.mxu0 %v2803_v60  ;;  %v2927_v60 = vld [vmem:[#allocation5 + $0x80] ss:$28 sps:$4 sm:$0xff]  }
  0xda   :  { %879 = vmatpush1.bf16.msra.mxu0 %v2801_v61  ;;  %v2929_v61 = vld [vmem:[#allocation5 + $0x84] ss:$28 sps:$4 sm:$0xff]  }
  0xdb   :  { %880 = vmatprep.subr.bf16.mxu0 %v2806_v62  ;;  %v2933_v62 = vld [vmem:[#allocation5 + $0xb8] ss:$28 sps:$4 sm:$0xff]  }
  0xde   :  { %881 = vmatpush1.bf16.msra.mxu0 %v2804_v63  ;;  %v2935_v63 = vld [vmem:[#allocation5 + $0xbc] ss:$28 sps:$4 sm:$0xff]  }
  0xdf   :  { %882 = vmatprep.subr.bf16.mxu0 %v2809_v0  ;;  %v2939_v0 = vld [vmem:[#allocation5 + $0xf0] ss:$28 sps:$4 sm:$0xff]  }
  0xe2   :  { %883 = vmatpush1.bf16.msra.mxu0 %v2807_v1  ;;  %v2941_v1 = vld [vmem:[#allocation5 + $0xf4] ss:$28 sps:$4 sm:$0xff]  }
  0xe3   :  { %884 = vmatprep.subr.bf16.mxu0 %v2812_v2  ;;  %v2945_v2 = vld [vmem:[#allocation5 + $0x128] ss:$28 sps:$4 sm:$0xff]  }
  0xe6   :  { %885 = vmatpush1.bf16.msra.mxu0 %v2810_v3  ;;  %v2947_v3 = vld [vmem:[#allocation5 + $0x12c] ss:$28 sps:$4 sm:$0xff]  }
  0xe7   :  { %895 = vmatprep.subr.bf16.mxu0 %v2817_v4  ;;  %v2951_v4 = vld [vmem:[#allocation5 + $0x160] ss:$28 sps:$4 sm:$0xff]  }
  0xe9   :  { %887 = vmatmul.mubr.bf16.vlgmr.msra.gmra.mrb[0].mxu0 %v2337_v5  ;;  %v2953_v5 = vld [vmem:[#allocation5 + $0x164] ss:$28 sps:$4 sm:$0xff]  }
  0xea   :  { %896 = vmatpush1.bf16.msra.mxu0 %v2815_v6  ;;  %927 = vmatprep.mubr.bf16.mxu0 %v3226_v9  ;;  %v2957_v6 = vld [vmem:[#allocation5 + $0x198] ss:$28 sps:$4 sm:$0xff]  }
  0xeb   :  { %897 = vmatprep.subr.bf16.mxu0 %v2820_v7  ;;  %v2959_v7 = vld [vmem:[#allocation5 + $0x19c] ss:$28 sps:$4 sm:$0xff]  }
  0xee   :  { %898 = vmatpush1.bf16.msra.mxu0 %v2818_v8  ;;  %v2963_v8 = vld [vmem:[#allocation5 + $0x1d0] ss:$28 sps:$4 sm:$0xff]  }
  0xef   :  { %899 = vmatprep.subr.bf16.mxu0 %v2823_v10  ;;  %v2969_v10 = vld [vmem:[#allocation5 + $0x208] ss:$28 sps:$4 sm:$0xff]  }
  0xf2   :  { %900 = vmatpush1.bf16.msra.mxu0 %v2821_v11  ;;  %v2971_v11 = vld [vmem:[#allocation5 + $0x20c] ss:$28 sps:$4 sm:$0xff]  }
  0xf3   :  { %901 = vmatprep.subr.bf16.mxu0 %v2826_v12  ;;  %v2975_v12 = vld [vmem:[#allocation5 + $0x240] ss:$28 sps:$4 sm:$0xff]  }
  0xf6   :  { %902 = vmatpush1.bf16.msra.mxu0 %v2824_v13  ;;  %v2977_v13 = vld [vmem:[#allocation5 + $0x244] ss:$28 sps:$4 sm:$0xff]  }
  0xf7   :  { %903 = vmatprep.subr.bf16.mxu0 %v2829_v14  ;;  %v2981_v14 = vld [vmem:[#allocation5 + $0x278] ss:$28 sps:$4 sm:$0xff]  }
  0xfa   :  { %904 = vmatpush1.bf16.msra.mxu0 %v2827_v15  ;;  %v2983_v15 = vld [vmem:[#allocation5 + $0x27c] ss:$28 sps:$4 sm:$0xff]  }
  0xfb   :  { %905 = vmatprep.subr.bf16.mxu0 %v2832_v16  ;;  %v2987_v16 = vld [vmem:[#allocation5 + $0x2b0] ss:$28 sps:$4 sm:$0xff]  }
  0xfe   :  { %906 = vmatpush1.bf16.msra.mxu0 %v2830_v17  ;;  %v2989_v17 = vld [vmem:[#allocation5 + $0x2b4] ss:$28 sps:$4 sm:$0xff]  }
  0xff   :  { %907 = vmatprep.subr.bf16.mxu0 %v2835_v18  ;;  %v2993_v18 = vld [vmem:[#allocation5 + $0x2e8] ss:$28 sps:$4 sm:$0xff]  }
 0x102   :  { %908 = vmatpush1.bf16.msra.mxu0 %v2833_v19  ;;  %v2995_v19 = vld [vmem:[#allocation5 + $0x2ec] ss:$28 sps:$4 sm:$0xff]  }
 0x103   :  { %909 = vmatprep.subr.bf16.mxu0 %v2838_v20  ;;  %v974_v20 = vlaneseq }
 0x106   :  { %910 = vmatpush1.bf16.msra.mxu0 %v2836_v21  ;;  %v3493_v21 = vshrl.u32 %v974_v20, 7 }
 0x107   :  { %2158 = vmatprep.subr.bf16.mxu0 %v2917_v57  ;;  %v2968_v57 = vld [vmem:[#allocation5 + $0x1fc] ss:$28 sps:$4 sm:$0xff]  }
 0x108   :  { %v980_v24 = vsub.s32 1, %v3493_v21 }
 0x109   :  { %928 = vmatmul.mubr.bf16.vlgmr.msra.gmra.mrb[0].mxu0 %v2839_v22  ;;  %v976_v22 = vsub.s32 0, %v3493_v21 }
 0x10a   :  { %2159 = vmatpush1.bf16.msra.mxu0 %v2915_v56  ;;  %v981_v26 = vrot.slane %v972_v23, %v980_v24  ;;  %v2960_v56 = vld [vmem:[#allocation5 + $0x1c0] ss:$28 sps:$4 sm:$0xff]  }
 0x10b   :  { %2160 = vmatprep.subr.bf16.mxu0 %v2923_v59  ;;  %v977_v25 = vrot.slane %v972_v23, %v976_v22  ;;  %v2974_v59 = vld [vmem:[#allocation5 + $0x234] ss:$28 sps:$4 sm:$0xff]  }
 0x10e   :  { %2161 = vmatpush1.bf16.msra.mxu0 %v2921_v58  ;;  %v2966_v58 = vld [vmem:[#allocation5 + $0x1f8] ss:$28 sps:$4 sm:$0xff]  }
 0x10f   :  { %2162 = vmatprep.subr.bf16.mxu0 %v2929_v61  ;;  %v2980_v61 = vld [vmem:[#allocation5 + $0x26c] ss:$28 sps:$4 sm:$0xff]  }
 0x112   :  { %2163 = vmatpush1.bf16.msra.mxu0 %v2927_v60  ;;  %v2972_v60 = vld [vmem:[#allocation5 + $0x230] ss:$28 sps:$4 sm:$0xff]  }
 0x113   :  { %2164 = vmatprep.subr.bf16.mxu0 %v2935_v63  ;;  %v2986_v63 = vld [vmem:[#allocation5 + $0x2a4] ss:$28 sps:$4 sm:$0xff]  }
 0x116   :  { %2165 = vmatpush1.bf16.msra.mxu0 %v2933_v62  ;;  %v2978_v62 = vld [vmem:[#allocation5 + $0x268] ss:$28 sps:$4 sm:$0xff]  }
 0x117   :  { %2166 = vmatprep.subr.bf16.mxu0 %v2941_v1  ;;  %v2992_v1 = vld [vmem:[#allocation5 + $0x2dc] ss:$28 sps:$4 sm:$0xff]  }
 0x11a   :  { %2167 = vmatpush1.bf16.msra.mxu0 %v2939_v0  ;;  %v2984_v0 = vld [vmem:[#allocation5 + $0x2a0] ss:$28 sps:$4 sm:$0xff]  }
 0x11b   :  { %2168 = vmatprep.subr.bf16.mxu0 %v2947_v3  ;;  %v2998_v3 = vld [vmem:[#allocation5 + $0x314] ss:$28 sps:$4 sm:$0xff]  }
 0x11e   :  { %2169 = vmatpush1.bf16.msra.mxu0 %v2945_v2  ;;  %v2990_v2 = vld [vmem:[#allocation5 + $0x2d8] ss:$28 sps:$4 sm:$0xff]  }
 0x11f   :  { %2170 = vmatprep.subr.bf16.mxu0 %v2953_v5  ;;  %v3001_v5 = vld [vmem:[#allocation5 + $0x324] ss:$28 sps:$4 sm:$0xff]  }
 0x122   :  { %2171 = vmatpush1.bf16.msra.mxu0 %v2951_v4  ;;  %v2996_v4 = vld [vmem:[#allocation5 + $0x310] ss:$28 sps:$4 sm:$0xff]  }
 0x123   :  { %2172 = vmatprep.subr.bf16.mxu0 %v2959_v7  ;;  %v3004_v7 = vld [vmem:[#allocation5 + $0x34c] ss:$28 sps:$4 sm:$0xff]  }
 0x126   :  { %2173 = vmatpush1.bf16.msra.mxu0 %v2957_v6  ;;  %v2999_v6 = vld [vmem:[#allocation5 + $0x320] ss:$28 sps:$4 sm:$0xff]  }
 0x1dc   :  { %v929_v30 = vpop.f32.mrb[0].mxu0 }
 0x1dd   :  { %v2641_v31 = vadd.f32 %v929_v30, %v185_v28  ;;  %v931_v32 = vpop.f32.mrb[1].mxu0 }
 0x1de   :  { %v2642_v33 = vadd.f32 %v931_v32, %v186_v29  ;;  %v933_v34 = vpop.f32.mrb[2].mxu0 }
 0x1df   :  { %v936_v35 = vmax.f32 %v2641_v31, 0.0  ;;  %v934_v36 = vpop.f32.mrb[3].mxu0 }
 0x1e0   :  { %v937_v37 = vmax.f32 %v2642_v33, 0.0 }
 0x1e1   :  { %v938_v40 = vpack.c.bf16 %v936_v35, %v936_v35  ;;  %v1185_v35 = vld [vmem:[%s3583_s1] sm:$0xff] }
 0x1e2   :  { %v939_v38 = vpack.c.bf16 %v937_v37, %v937_v37 }
 0x1e4   :  { %1176 = vmatprep.mubr.bf16.mxu1 %v939_v38 }
 0x1e5   :  { %1177 = vmatmul.mubr.bf16.vlgmr.msra.gmra.mrb[0].mxu1 %v938_v40 }
 0x1e6   :  { %1291 = vmatpush1.bf16.msra.mxu1 %v2888_v39  ;;  %1322 = vmatprep.mubr.bf16.mxu1 %v3226_v9  ;;  %v2965_v9 = vld [vmem:[#allocation5 + $0x1d4] ss:$28 sps:$4 sm:$0xff]   ;;  %v2912_v39 = vld [vmem:[#allocation5] ss:$28 sps:$4 sm:$0xff]  }
 0x1e7   :  { %1292 = vmatprep.subr.bf16.mxu1 %v2893_v41  ;;  %2174 = vmatprep.subr.bf16.mxu0 %v2965_v9  ;;  %v2920_v41 = vld [vmem:[#allocation5 + $0x3c] ss:$28 sps:$4 sm:$0xff]  }
 0x1e8   :  { %2175 = vmatpush1.bf16.msra.mxu0 %v2963_v8  ;;  %v3002_v8 = vld [vmem:[#allocation5 + $0x348] ss:$28 sps:$4 sm:$0xff]   ;;  %v3007_v9 = vld [vmem:[#allocation5 + $0x35c] ss:$28 sps:$4 sm:$0xff]  }
 0x1e9   :  { %2176 = vmatprep.subr.bf16.mxu0 %v2971_v11  ;;  %v3010_v11 = vld [vmem:[#allocation5 + $0xc] ss:$28 sps:$4 sm:$0xff]  }
 0x1ea   :  { %1293 = vmatpush1.bf16.msra.mxu1 %v2891_v42  ;;  %v2918_v42 = vld [vmem:[#allocation5 + $0x38] ss:$28 sps:$4 sm:$0xff]  }
 0x1eb   :  { %1294 = vmatprep.subr.bf16.mxu1 %v2896_v43  ;;  %v2926_v43 = vld [vmem:[#allocation5 + $0x74] ss:$28 sps:$4 sm:$0xff]  }
 0x1ec   :  { %2177 = vmatpush1.bf16.msra.mxu0 %v2969_v10  ;;  %v3005_v10 = vld [vmem:[#allocation5 + $0x358] ss:$28 sps:$4 sm:$0xff]  }
 0x1ed   :  { %2178 = vmatprep.subr.bf16.mxu0 %v2977_v13  ;;  %v1209_v13 = vld [vmem:[%s3585_s3 + $0x8] sm:$0xff] }
 0x1ee   :  { %1295 = vmatpush1.bf16.msra.mxu1 %v2894_v44  ;;  %v2924_v44 = vld [vmem:[#allocation5 + $0x70] ss:$28 sps:$4 sm:$0xff]  }
 0x1ef   :  { %1296 = vmatprep.subr.bf16.mxu1 %v2899_v45  ;;  %v2932_v45 = vld [vmem:[#allocation5 + $0xac] ss:$28 sps:$4 sm:$0xff]  }
 0x1f0   :  { %2179 = vmatpush1.bf16.msra.mxu0 %v2975_v12  ;;  %v1208_v12 = vld [vmem:[%s3585_s3] sm:$0xff] }
 0x1f1   :  { %2180 = vmatprep.subr.bf16.mxu0 %v2983_v15 }
 0x1f2   :  { %1297 = vmatpush1.bf16.msra.mxu1 %v2897_v46  ;;  %v2930_v46 = vld [vmem:[#allocation5 + $0xa8] ss:$28 sps:$4 sm:$0xff]  }
 0x1f3   :  { %1298 = vmatprep.subr.bf16.mxu1 %v2902_v47  ;;  %v2938_v47 = vld [vmem:[#allocation5 + $0xe4] ss:$28 sps:$4 sm:$0xff]  }
 0x1f4   :  { %2181 = vmatpush1.bf16.msra.mxu0 %v2981_v14 }
 0x1f5   :  { %2182 = vmatprep.subr.bf16.mxu0 %v2989_v17 }
 0x1f6   :  { %1299 = vmatpush1.bf16.msra.mxu1 %v2900_v48  ;;  %v2936_v48 = vld [vmem:[#allocation5 + $0xe0] ss:$28 sps:$4 sm:$0xff]  }
 0x1f7   :  { %1300 = vmatprep.subr.bf16.mxu1 %v2905_v49  ;;  %v2944_v49 = vld [vmem:[#allocation5 + $0x11c] ss:$28 sps:$4 sm:$0xff]  }
 0x1f8   :  { %2183 = vmatpush1.bf16.msra.mxu0 %v2987_v16 }
 0x1f9   :  { %2184 = vmatprep.subr.bf16.mxu0 %v2995_v19 }
 0x1fa   :  { %1301 = vmatpush1.bf16.msra.mxu1 %v2903_v50  ;;  %v2942_v50 = vld [vmem:[#allocation5 + $0x118] ss:$28 sps:$4 sm:$0xff]  }
 0x1fb   :  { %1302 = vmatprep.subr.bf16.mxu1 %v2908_v51  ;;  %v2950_v51 = vld [vmem:[#allocation5 + $0x154] ss:$28 sps:$4 sm:$0xff]  }
 0x1fc   :  { %2185 = vmatpush1.bf16.msra.mxu0 %v2993_v18 }
 0x1fd   :  { %2186 = vmatprep.subr.bf16.mxu0 %v3001_v5  ;;  %v3067_v5 = vld [vmem:[#allocation5 + $0x130] ss:$28 sps:$4 sm:$0xff]  }
 0x1fe   :  { %1303 = vmatpush1.bf16.msra.mxu1 %v2906_v52  ;;  %v2948_v52 = vld [vmem:[#allocation5 + $0x150] ss:$28 sps:$4 sm:$0xff]  }
 0x1ff   :  { %1304 = vmatprep.subr.bf16.mxu1 %v2911_v53  ;;  %v2956_v53 = vld [vmem:[#allocation5 + $0x18c] ss:$28 sps:$4 sm:$0xff]  }
 0x200   :  { %2187 = vmatpush1.bf16.msra.mxu0 %v2999_v6  ;;  %v3068_v6 = vld [vmem:[#allocation5 + $0x328] ss:$28 sps:$4 sm:$0xff]  }
 0x201   :  { %2188 = vmatprep.subr.bf16.mxu0 %v3007_v9  ;;  %v3071_v9 = vld [vmem:[#allocation5 + $0x1a0] ss:$28 sps:$4 sm:$0xff]  }
 0x202   :  { %1305 = vmatpush1.bf16.msra.mxu1 %v2909_v54  ;;  %v2954_v54 = vld [vmem:[#allocation5 + $0x188] ss:$28 sps:$4 sm:$0xff]  }
 0x203   :  { %2076 = vmatprep.subr.bf16.mxu1 %v2914_v55  ;;  %v2962_v55 = vld [vmem:[#allocation5 + $0x1c4] ss:$28 sps:$4 sm:$0xff]  }
 0x204   :  { %2189 = vmatpush1.bf16.msra.mxu0 %v3005_v10  ;;  %v1483_v10 = vsub.s32 4, %v3493_v21 }
 0x2b8   :  { %v1178_v27 = vpop.f32.mrb[0].mxu1 }
 0x2b9   :  { %v1179_v28 = vadd.f32 %v1178_v27, %v977_v25  ;;  %v1180_v29 = vpop.f32.mrb[1].mxu1 }
 0x2ba   :  { %v1181_v30 = vadd.f32 %v1180_v29, %v981_v26  ;;  %v1182_v31 = vpop.f32.mrb[2].mxu1  ;;  %v3008_v26 = vld [vmem:[#allocation5 + $0x8] ss:$28 sps:$4 sm:$0xff]   ;;  %v3011_v29 = vld [vmem:[#allocation5 + $0x40] ss:$28 sps:$4 sm:$0xff]  }
 0x2bb   :  { %2288 = vst [vmem:[#allocation8] sm:$0xff] %v1179_v28  ;;  %v1183_v32 = vpop.f32.mrb[3].mxu1  ;;  %v3014_v31 = vld [vmem:[#allocation5 + $0x78] ss:$28 sps:$4 sm:$0xff]  }
 0x2bc   :  { %v1186_v33 = vmul.f32 0.5, %v1181_v30  ;;  %2289 = vst [vmem:[#allocation10] sm:$0xff] %v1181_v30  ;;  %v3016_v30 = vld [vmem:[#allocation5 + $0x7c] ss:$28 sps:$4 sm:$0xff]   ;;  %v3019_v32 = vld [vmem:[#allocation5 + $0xb4] ss:$28 sps:$4 sm:$0xff]  }
 0x2be   :  { %v1187_v34 = vmul.f32 1.442695, %v1186_v33  ;;  %v3017_v33 = vld [vmem:[#allocation5 + $0xb0] ss:$28 sps:$4 sm:$0xff]  }
 0x2c0   :  { %3072 = vpow2.f32 %v1187_v34  ;;  %v3022_v34 = vld [vmem:[#allocation5 + $0xec] ss:$28 sps:$4 sm:$0xff]  }
 0x2ca   :  { %v3073_v36 = vpop.eup %3072 }
 0x2cb   :  { %v1189_v37 = vmul.f32 %v3073_v36, %v1185_v35  ;;  %v3020_v35 = vld [vmem:[#allocation5 + $0xe8] ss:$28 sps:$4 sm:$0xff]  }
 0x2cc   :  { %v3025_v36 = vld [vmem:[#allocation5 + $0x124] ss:$28 sps:$4 sm:$0xff]  }
 0x2cd   :  { %v1190_v38 = vadd.f32 %v1189_v37, %v1179_v28  ;;  %v3013_v28 = vld [vmem:[#allocation5 + $0x44] ss:$28 sps:$4 sm:$0xff]  }
 0x2ce   :  { %v3023_v37 = vld [vmem:[#allocation5 + $0x120] ss:$28 sps:$4 sm:$0xff]  }
 0x2cf   :  { %v1191_v40 = vpack.c.bf16 %v1190_v38, %v1190_v38  ;;  %v3028_v38 = vld [vmem:[#allocation5 + $0x15c] ss:$28 sps:$4 sm:$0xff]  }
 0x2d1   :  { %1323 = vmatmul.mubr.bf16.vlgmr.msra.gmra.mrb[4].mxu1 %v1191_v40  ;;  %v3031_v40 = vld [vmem:[#allocation5 + $0x194] ss:$28 sps:$4 sm:$0xff]  }
 0x2d2   :  { %2077 = vmatpush1.bf16.msra.mxu1 %v2912_v39  ;;  %v3026_v39 = vld [vmem:[#allocation5 + $0x158] ss:$28 sps:$4 sm:$0xff]  }
 0x2d3   :  { %2078 = vmatprep.subr.bf16.mxu1 %v2920_v41  ;;  %v3029_v41 = vld [vmem:[#allocation5 + $0x190] ss:$28 sps:$4 sm:$0xff]  }
 0x2d6   :  { %2079 = vmatpush1.bf16.msra.mxu1 %v2918_v42  ;;  %v3034_v42 = vld [vmem:[#allocation5 + $0x1cc] ss:$28 sps:$4 sm:$0xff]  }
 0x2d7   :  { %2080 = vmatprep.subr.bf16.mxu1 %v2926_v43  ;;  %v3032_v43 = vld [vmem:[#allocation5 + $0x1c8] ss:$28 sps:$4 sm:$0xff]  }
 0x2da   :  { %2081 = vmatpush1.bf16.msra.mxu1 %v2924_v44  ;;  %v3037_v44 = vld [vmem:[#allocation5 + $0x204] ss:$28 sps:$4 sm:$0xff]  }
 0x2db   :  { %2082 = vmatprep.subr.bf16.mxu1 %v2932_v45  ;;  %v3035_v45 = vld [vmem:[#allocation5 + $0x200] ss:$28 sps:$4 sm:$0xff]  }
 0x2de   :  { %2083 = vmatpush1.bf16.msra.mxu1 %v2930_v46  ;;  %v3040_v46 = vld [vmem:[#allocation5 + $0x23c] ss:$28 sps:$4 sm:$0xff]  }
 0x2df   :  { %2084 = vmatprep.subr.bf16.mxu1 %v2938_v47  ;;  %v3038_v47 = vld [vmem:[#allocation5 + $0x238] ss:$28 sps:$4 sm:$0xff]  }
 0x2e2   :  { %2085 = vmatpush1.bf16.msra.mxu1 %v2936_v48  ;;  %v3043_v48 = vld [vmem:[#allocation5 + $0x274] ss:$28 sps:$4 sm:$0xff]  }
 0x2e3   :  { %2086 = vmatprep.subr.bf16.mxu1 %v2944_v49  ;;  %v3041_v49 = vld [vmem:[#allocation5 + $0x270] ss:$28 sps:$4 sm:$0xff]  }
 0x2e6   :  { %2087 = vmatpush1.bf16.msra.mxu1 %v2942_v50  ;;  %v3046_v50 = vld [vmem:[#allocation5 + $0x2ac] ss:$28 sps:$4 sm:$0xff]  }
 0x2e7   :  { %2088 = vmatprep.subr.bf16.mxu1 %v2950_v51  ;;  %v3044_v51 = vld [vmem:[#allocation5 + $0x2a8] ss:$28 sps:$4 sm:$0xff]  }
 0x2ea   :  { %2089 = vmatpush1.bf16.msra.mxu1 %v2948_v52  ;;  %v3049_v52 = vld [vmem:[#allocation5 + $0x2e4] ss:$28 sps:$4 sm:$0xff]  }
 0x2eb   :  { %2090 = vmatprep.subr.bf16.mxu1 %v2956_v53  ;;  %v3047_v53 = vld [vmem:[#allocation5 + $0x2e0] ss:$28 sps:$4 sm:$0xff]  }
 0x2ee   :  { %2091 = vmatpush1.bf16.msra.mxu1 %v2954_v54  ;;  %v3052_v54 = vld [vmem:[#allocation5 + $0x31c] ss:$28 sps:$4 sm:$0xff]  }
 0x2ef   :  { %2092 = vmatprep.subr.bf16.mxu1 %v2962_v55  ;;  %v3050_v55 = vld [vmem:[#allocation5 + $0x318] ss:$28 sps:$4 sm:$0xff]  }
 0x2f2   :  { %2093 = vmatpush1.bf16.msra.mxu1 %v2960_v56  ;;  %v3055_v56 = vld [vmem:[#allocation5 + $0x354] ss:$28 sps:$4 sm:$0xff]  }
 0x2f3   :  { %2094 = vmatprep.subr.bf16.mxu1 %v2968_v57  ;;  %v3053_v57 = vld [vmem:[#allocation5 + $0x350] ss:$28 sps:$4 sm:$0xff]  }
 0x2f6   :  { %2095 = vmatpush1.bf16.msra.mxu1 %v2966_v58  ;;  %v3056_v58 = vld [vmem:[#allocation5 + $0x1d8] ss:$28 sps:$4 sm:$0xff]  }
 0x2f7   :  { %2096 = vmatprep.subr.bf16.mxu1 %v2974_v59  ;;  %v3057_v59 = vld [vmem:[#allocation5 + $0x18] ss:$28 sps:$4 sm:$0xff]  }
 0x2fa   :  { %2097 = vmatpush1.bf16.msra.mxu1 %v2972_v60  ;;  %v3058_v60 = vld [vmem:[#allocation5 + $0x210] ss:$28 sps:$4 sm:$0xff]  }
 0x2fb   :  { %2098 = vmatprep.subr.bf16.mxu1 %v2980_v61  ;;  %v3059_v61 = vld [vmem:[#allocation5 + $0x50] ss:$28 sps:$4 sm:$0xff]  }
 0x2fe   :  { %2099 = vmatpush1.bf16.msra.mxu1 %v2978_v62  ;;  %v3060_v62 = vld [vmem:[#allocation5 + $0x248] ss:$28 sps:$4 sm:$0xff]  }
 0x2ff   :  { %2100 = vmatprep.subr.bf16.mxu1 %v2986_v63  ;;  %v3061_v63 = vld [vmem:[#allocation5 + $0x88] ss:$28 sps:$4 sm:$0xff]  }
 0x302   :  { %2101 = vmatpush1.bf16.msra.mxu1 %v2984_v0  ;;  %v3062_v0 = vld [vmem:[#allocation5 + $0x280] ss:$28 sps:$4 sm:$0xff]  }
 0x303   :  { %2102 = vmatprep.subr.bf16.mxu1 %v2992_v1  ;;  %v3063_v1 = vld [vmem:[#allocation5 + $0xc0] ss:$28 sps:$4 sm:$0xff]  }
 0x306   :  { %2103 = vmatpush1.bf16.msra.mxu1 %v2990_v2  ;;  %v3064_v2 = vld [vmem:[#allocation5 + $0x2b8] ss:$28 sps:$4 sm:$0xff]  }
 0x307   :  { %2104 = vmatprep.subr.bf16.mxu1 %v2998_v3  ;;  %v3065_v3 = vld [vmem:[#allocation5 + $0xf8] ss:$28 sps:$4 sm:$0xff]  }
 0x30a   :  { %2105 = vmatpush1.bf16.msra.mxu1 %v2996_v4  ;;  %v3066_v4 = vld [vmem:[#allocation5 + $0x2f0] ss:$28 sps:$4 sm:$0xff]  }
 0x30b   :  { %2106 = vmatprep.subr.bf16.mxu1 %v3004_v7  ;;  %v3069_v7 = vld [vmem:[#allocation5 + $0x168] ss:$28 sps:$4 sm:$0xff]  }
 0x30e   :  { %2107 = vmatpush1.bf16.msra.mxu1 %v3002_v8  ;;  %v3070_v8 = vld [vmem:[#allocation5 + $0x360] ss:$28 sps:$4 sm:$0xff]  }
 0x30f   :  { %2117 = vmatprep.subr.bf16.mxu1 %v3010_v11  ;;  %v3529_v11 = vld [vmem:[%s3591_s9] sm:$0xff]  ;;  %s3146_s9 = scalar_lea.vmem %s2307_s20, 128 }
 0x310   :  { %p3147_p2 = scmp.ne.s32.totalorder %s2307_s20, %s3146_s9  ;;  %p3152_p4 = scmp.lt.s32.totalorder %s3146_s9, %s3146_s9 }
 0x312   :  { %p3153_p5 = por %p3152_p4, %p3151_p3 }
 0x314   :  { %p3154_p6 = pnand %p3153_p5, %p3147_p2 }
 0x3a4   :  { %v1324_v14 = vpop.f32.mrb[4].mxu1 }
 0x3a5   :  { %v1325_v15 = vadd.f32 %v1324_v14, %v1208_v12  ;;  %v1326_v16 = vpop.f32.mrb[5].mxu1  ;;  %v1487_v12 = vsub.s32 5, %v3493_v21  ;;  %v1484_v14 = vrot.slane %v3529_v11, %v1483_v10 }
 0x3a6   :  { %v1327_v17 = vadd.f32 %v1326_v16, %v1209_v13  ;;  %v1328_v18 = vpop.f32.mrb[6].mxu1  ;;  %v1468_v13 = vrot.slane %v3529_v11, %v976_v22 }
 0x3a7   :  { %v1331_v19 = vmax.f32 %v1325_v15, 0.0  ;;  %v1329_v20 = vpop.f32.mrb[7].mxu1  ;;  %v1472_v15 = vrot.slane %v3529_v11, %v980_v24  ;;  %v1488_v16 = vrot.slane %v3529_v11, %v1487_v12 }
 0x3a8   :  { %v1332_v23 = vmax.f32 %v1327_v17, 0.0 }
 0x3a9   :  { %v3515_v27 = vpack.c.bf16 %v1331_v19, %v1331_v19 }
 0x3aa   :  { %v3513_v25 = vpack.c.bf16 %v1332_v23, %v1332_v23 }
 0x3ac   :  { %2108 = vmatprep.mubr.bf16.mxu1 %v3513_v25  ;;  %2190 = vmatprep.mubr.bf16.mxu0 %v3513_v25 }
 0x3ad   :  { %2109 = vmatmul.mubr.bf16.vlgmr.msra.gmra.mrb[8].mxu1 %v3515_v27  ;;  %2191 = vmatmul.mubr.bf16.vlgmr.msra.gmra.mrb[4].mxu0 %v3515_v27 }
 0x3ae   :  { %2118 = vmatpush1.bf16.msra.mxu1 %v3008_v26  ;;  %2149 = vmatprep.mubr.bf16.mxu1 %v3513_v25 }
 0x3af   :  { %2119 = vmatprep.subr.bf16.mxu1 %v3013_v28 }
 0x3b2   :  { %2120 = vmatpush1.bf16.msra.mxu1 %v3011_v29 }
 0x3b3   :  { %2121 = vmatprep.subr.bf16.mxu1 %v3016_v30 }
 0x3b6   :  { %2122 = vmatpush1.bf16.msra.mxu1 %v3014_v31 }
 0x3b7   :  { %2123 = vmatprep.subr.bf16.mxu1 %v3019_v32 }
 0x3ba   :  { %2124 = vmatpush1.bf16.msra.mxu1 %v3017_v33 }
 0x3bb   :  { %2125 = vmatprep.subr.bf16.mxu1 %v3022_v34 }
 0x3be   :  { %2126 = vmatpush1.bf16.msra.mxu1 %v3020_v35 }
 0x3bf   :  { %2127 = vmatprep.subr.bf16.mxu1 %v3025_v36 }
 0x3c2   :  { %2128 = vmatpush1.bf16.msra.mxu1 %v3023_v37 }
 0x3c3   :  { %2129 = vmatprep.subr.bf16.mxu1 %v3028_v38 }
 0x3c6   :  { %2130 = vmatpush1.bf16.msra.mxu1 %v3026_v39 }
 0x3c7   :  { %2131 = vmatprep.subr.bf16.mxu1 %v3031_v40 }
 0x3ca   :  { %2132 = vmatpush1.bf16.msra.mxu1 %v3029_v41 }
 0x3cb   :  { %2133 = vmatprep.subr.bf16.mxu1 %v3034_v42 }
 0x3ce   :  { %2134 = vmatpush1.bf16.msra.mxu1 %v3032_v43 }
 0x3cf   :  { %2135 = vmatprep.subr.bf16.mxu1 %v3037_v44 }
 0x3d2   :  { %2136 = vmatpush1.bf16.msra.mxu1 %v3035_v45 }
 0x3d3   :  { %2137 = vmatprep.subr.bf16.mxu1 %v3040_v46 }
 0x3d6   :  { %2138 = vmatpush1.bf16.msra.mxu1 %v3038_v47 }
 0x3d7   :  { %2139 = vmatprep.subr.bf16.mxu1 %v3043_v48 }
 0x3da   :  { %2140 = vmatpush1.bf16.msra.mxu1 %v3041_v49 }
 0x3db   :  { %2141 = vmatprep.subr.bf16.mxu1 %v3046_v50 }
 0x3de   :  { %2142 = vmatpush1.bf16.msra.mxu1 %v3044_v51 }
 0x3df   :  { %2143 = vmatprep.subr.bf16.mxu1 %v3049_v52 }
 0x3e2   :  { %2144 = vmatpush1.bf16.msra.mxu1 %v3047_v53 }
 0x3e3   :  { %2145 = vmatprep.subr.bf16.mxu1 %v3052_v54 }
 0x3e6   :  { %2146 = vmatpush1.bf16.msra.mxu1 %v3050_v55 }
 0x3e7   :  { %2147 = vmatprep.subr.bf16.mxu1 %v3055_v56 }
 0x3ea   :  { %2148 = vmatpush1.bf16.msra.mxu1 %v3053_v57 }
 0x3eb   :  { %2619 = vmatprep.subr.bf16.mxu1 %v3056_v58 }
 0x3ed   :  { %2150 = vmatmul.mubr.bf16.vlgmr.msra.gmra.mrb[12].mxu1 %v3515_v27 }
 0x3ee   :  { %2620 = vmatpush3.bf16.msra.mxu1 %v3057_v59  ;;  %2231 = vmatprep.mubr.bf16.mxu1 %v3513_v25 }
 0x3ef   :  { %2621 = vmatprep.subr.bf16.mxu1 %v3058_v60 }
 0x3f2   :  { %2622 = vmatpush3.bf16.msra.mxu1 %v3059_v61 }
 0x3f3   :  { %2623 = vmatprep.subr.bf16.mxu1 %v3060_v62 }
 0x3f6   :  { %2624 = vmatpush3.bf16.msra.mxu1 %v3061_v63 }
 0x3f7   :  { %2625 = vmatprep.subr.bf16.mxu1 %v3062_v0 }
 0x3fa   :  { %2626 = vmatpush3.bf16.msra.mxu1 %v3063_v1 }
 0x3fb   :  { %2627 = vmatprep.subr.bf16.mxu1 %v3064_v2 }
 0x3fe   :  { %2628 = vmatpush3.bf16.msra.mxu1 %v3065_v3 }
 0x3ff   :  { %2629 = vmatprep.subr.bf16.mxu1 %v3066_v4 }
 0x402   :  { %2630 = vmatpush3.bf16.msra.mxu1 %v3067_v5 }
 0x403   :  { %2631 = vmatprep.subr.bf16.mxu1 %v3068_v6 }
 0x406   :  { %2632 = vmatpush3.bf16.msra.mxu1 %v3069_v7 }
 0x407   :  { %2633 = vmatprep.subr.bf16.mxu1 %v3070_v8 }
 0x40a   :  { %2634 = vmatpush3.bf16.msra.mxu1 %v3071_v9 }
 0x40d   :  { %2232 = vmatmul.mubr.bf16.vlgmr.msra.gmra.mrb[16].mxu1 %v3515_v27 }
 0x480   :  { %v2110_v17 = vpop.f32.mrb[8].mxu1  ;;  %v2192_v18 = vpop.f32.mrb[4].mxu0 }
 0x481   :  { %v2111_v19 = vadd.f32 %v2110_v17, %v1468_v13  ;;  %v2193_v20 = vadd.f32 %v2192_v18, %v1484_v14  ;;  %v2112_v23 = vpop.f32.mrb[9].mxu1  ;;  %v2194_v25 = vpop.f32.mrb[5].mxu0 }
 0x482   :  { %3157 = shalt.err (!%p3154_p6)
}
 0x483   :  { %s3158_s0 = scalar_lea.hbm %s3593_s11, 128 }
 0x484   :  { %p3159_p7 = scmp.ne.s32.totalorder %s3593_s11, %s3158_s0  ;;  %p3162_p8 = scmp.lt.u32.totalorder %s3158_s0, %s3593_s11 }
 0x486   :  { %p3164_p9 = pnand %p3162_p8, %p3159_p7 }
 0x488   :  { %3167 = shalt.err (!%p3164_p9)
}
 0x489   :  { %2309 = dma.vmem_to_hbm [thread:$0]  %s2307_s20, 128, %s3593_s11, [#allocation9]   ;;  %v2113_v22 = vadd.f32 %v2112_v23, %v1472_v15  ;;  %v2195_v24 = vadd.f32 %v2194_v25, %v1488_v16  ;;  %v2114_v26 = vpop.f32.mrb[10].mxu1  ;;  %v2196_v27 = vpop.f32.mrb[6].mxu0  ;;  %v2612_v28 = vmul.f32 -1.442695, %v2111_v19 }
 0x48a   :  { %v2616_v29 = vmul.f32 -1.442695, %v2193_v20  ;;  %v2115_v30 = vpop.f32.mrb[11].mxu1  ;;  %v2197_v31 = vpop.f32.mrb[7].mxu0  ;;  %s3228_s22 = smov [#allocation10]  }
 0x48b   :  { %v2613_v32 = vmul.f32 -1.442695, %v2113_v22  ;;  %v2617_v33 = vmul.f32 -1.442695, %v2195_v24  ;;  %s2316_s28 = sshll.u32 %s3228_s22, 4  ;;  %3074 = vpow2.f32 %v2612_v28  ;;  %s2317_s28 = int_to_ptr.vmem [resolvable:$true] %s2316_s28 }
 0x48c   :  { %3076 = vpow2.f32 %v2616_v29  ;;  %s3168_s29 = scalar_lea.vmem %s2317_s28, 128  ;;  %p3173_p11 = scmp.lt.s32.totalorder %s2317_s28, %s2317_s28 }
 0x48d   :  { %p3169_p10 = scmp.ne.s32.totalorder %s2317_s28, %s3168_s29  ;;  %p3174_p12 = scmp.lt.s32.totalorder %s3168_s29, %s3168_s29 }
 0x48f   :  { %p3175_p13 = por %p3174_p12, %p3173_p11 }
 0x491   :  { %p3176_p0 = pnand %p3175_p13, %p3169_p10 }
 0x493   :  { %3179 = shalt.err (!%p3176_p0)
}
 0x494   :  { %s3180_s8 = scalar_lea.hbm %s3594_s12, 128 }
 0x495   :  { %p3181_p1 = scmp.ne.s32.totalorder %s3594_s12, %s3180_s8  ;;  %p3184_p2 = scmp.lt.u32.totalorder %s3180_s8, %s3594_s12 }
 0x497   :  { %p3186_p3 = pnand %p3184_p2, %p3181_p1 }
 0x499   :  { %3189 = shalt.err (!%p3186_p3)
}
 0x49a   :  { %2319 = dma.vmem_to_hbm [thread:$0]  %s2317_s28, 128, %s3594_s12, [#allocation9]   ;;  %3078 = vpow2.f32 %v2613_v32  ;;  %v3075_v34 = vpop.eup %3074  ;;  %v1475_v46 = vsub.s32 2, %v3493_v21  ;;  %v1479_v47 = vsub.s32 3, %v3493_v21  ;;  %v1491_v63 = vsub.s32 6, %v3493_v21 }
 0x49b   :  { %3080 = vpow2.f32 %v2617_v33  ;;  %v3077_v35 = vpop.eup %3076  ;;  %v2260_v36 = vadd.f32 1.0, %v3075_v34  ;;  %s3229_s12 = smov [#allocation7]  }
 0x49c   :  { %v2264_v38 = vadd.f32 1.0, %v3077_v35  ;;  %v1476_v48 = vrot.slane %v3529_v11, %v1475_v46  ;;  %v1480_v49 = vrot.slane %v3529_v11, %v1479_v47  ;;  %v1492_v2 = vrot.slane %v3529_v11, %v1491_v63  ;;  %s2296_s15 = sshll.u32 %s3229_s12, 4  ;;  %s2297_s15 = int_to_ptr.vmem [resolvable:$true] %s2296_s15 }
 0x49d   :  { %3082 = vrcp.f32 %v2260_v36  ;;  %s3190_s16 = scalar_lea.vmem %s2297_s15, 896  ;;  %p3195_p5 = scmp.lt.s32.totalorder %s2297_s15, %s2297_s15 }
 0x49e   :  { %3084 = vrcp.f32 %v2264_v38  ;;  %p3191_p4 = scmp.ne.s32.totalorder %s2297_s15, %s3190_s16  ;;  %p3196_p6 = scmp.lt.s32.totalorder %s3190_s16, %s3190_s16 }
 0x4a0   :  { %p3197_p7 = por %p3196_p6, %p3195_p5 }
 0x4a2   :  { %p3198_p8 = pnand %p3197_p7, %p3191_p4 }
 0x4a4   :  { %v3079_v37 = vpop.eup %3078 }
 0x4a5   :  { %v3081_v39 = vpop.eup %3080  ;;  %v2261_v40 = vadd.f32 1.0, %v3079_v37 }
 0x4a6   :  { %v2265_v41 = vadd.f32 1.0, %v3081_v39 }
 0x4a7   :  { %3086 = vrcp.f32 %v2261_v40  ;;  %v3083_v42 = vpop.eup %3082 }
 0x4a8   :  { %3088 = vrcp.f32 %v2265_v41  ;;  %v3085_v43 = vpop.eup %3084  ;;  %2281 = vst [vmem:[#allocation7] sm:$0xff] %v3083_v42 }
 0x4a9   :  { %2285 = vst [vmem:[#allocation7 + $0x20] sm:$0xff] %v3085_v43 }
 0x4b1   :  { %v3087_v44 = vpop.eup %3086 }
 0x4b2   :  { %v3089_v45 = vpop.eup %3088  ;;  %2282 = vst [vmem:[#allocation7 + $0x8] sm:$0xff] %v3087_v44 }
 0x4b3   :  { %2286 = vst [vmem:[#allocation7 + $0x28] sm:$0xff] %v3089_v45 }
 0x4c0   :  { %v2151_v50 = vpop.f32.mrb[12].mxu1 }
 0x4c1   :  { %v2152_v51 = vadd.f32 %v2151_v50, %v1476_v48  ;;  %v2153_v52 = vpop.f32.mrb[13].mxu1 }
 0x4c2   :  { %v2154_v53 = vadd.f32 %v2153_v52, %v1480_v49  ;;  %v2155_v54 = vpop.f32.mrb[14].mxu1 }
 0x4c3   :  { %v2614_v55 = vmul.f32 -1.442695, %v2152_v51  ;;  %v2156_v56 = vpop.f32.mrb[15].mxu1 }
 0x4c4   :  { %v2615_v57 = vmul.f32 -1.442695, %v2154_v53 }
 0x4c5   :  { %3090 = vpow2.f32 %v2614_v55 }
 0x4c6   :  { %3092 = vpow2.f32 %v2615_v57 }
 0x4cf   :  { %v3091_v58 = vpop.eup %3090 }
 0x4d0   :  { %v3093_v59 = vpop.eup %3092  ;;  %v2262_v60 = vadd.f32 1.0, %v3091_v58 }
 0x4d1   :  { %v2263_v61 = vadd.f32 1.0, %v3093_v59 }
 0x4d2   :  { %3094 = vrcp.f32 %v2262_v60 }
 0x4d3   :  { %3096 = vrcp.f32 %v2263_v61 }
 0x4dc   :  { %v3095_v62 = vpop.eup %3094 }
 0x4dd   :  { %v3097_v0 = vpop.eup %3096  ;;  %2283 = vst [vmem:[#allocation7 + $0x10] sm:$0xff] %v3095_v62 }
 0x4de   :  { %2284 = vst [vmem:[#allocation7 + $0x18] sm:$0xff] %v3097_v0 }
 0x4e0   :  { %v2635_v1 = vpop.f32.mrb[16].mxu1 }
 0x4e1   :  { %v2636_v3 = vpop.f32.mrb[17].mxu1 }
 0x4e2   :  { %v2637_v4 = vadd.f32 %v2636_v3, %v2635_v1  ;;  %v2638_v5 = vpop.f32.mrb[18].mxu1 }
 0x4e3   :  { %v2639_v6 = vpop.f32.mrb[19].mxu1 }
 0x4e4   :  { %v2234_v7 = vadd.f32 %v2637_v4, %v1492_v2 }
 0x4e6   :  { %v2618_v8 = vmul.f32 -1.442695, %v2234_v7 }
 0x4e8   :  { %3098 = vpow2.f32 %v2618_v8 }
 0x4f2   :  { %v3099_v9 = vpop.eup %3098 }
 0x4f3   :  { %v2266_v10 = vadd.f32 1.0, %v3099_v9 }
 0x4f5   :  { %3100 = vrcp.f32 %v2266_v10 }
 0x4ff   :  { %v3101_v21 = vpop.eup %3100 }
 0x500   :  { %2287 = vst [vmem:[#allocation7 + $0x30] sm:$0xff] %v3101_v21 }
 0x501   :  { %3201 = shalt.err (!%p3198_p8)
}
 0x502   :  { %s3202_s18 = scalar_lea.hbm %s3592_s10, 896 }
 0x503   :  { %p3203_p9 = scmp.ne.s32.totalorder %s3592_s10, %s3202_s18  ;;  %p3206_p10 = scmp.lt.u32.totalorder %s3202_s18, %s3592_s10 }
 0x505   :  { %p3208_p11 = pnand %p3206_p10, %p3203_p9 }
 0x507   :  { %3211 = shalt.err (!%p3208_p11)
}
 0x508   :  { %2299 = dma.vmem_to_hbm [thread:$0]  %s2297_s15, 896, %s3592_s10, [#allocation4]  }
 0x509   :  { %3216 = dma.done.wait [#allocation4], 896  }
 0x50a   :  { %3217 = vsyncadd [#allocation4], 4294966400 }
 0x50b   :  { %3218 = dma.done.wait [#allocation9], 256  }
 0x50c   :  { %3219 = vsyncadd [#allocation9], 4294967040 }
 0x50d   :  { %2329 = vsyncpa [#allocation3], 1 }
 0x50e   :  { %2330 = vsyncpa [#allocation6], 1 }
 0x50f   :  { %2331 = vsyncpa [#allocation4], 1 }
 0x510   :  { %2332 = vsyncpa [#allocation9], 1 }

</bundles_post_ra>
